<compile_context>
chip_gen: v7x
topology: tpu7x:2x2x1
jax: 0.10.0
libtpu: 0.0.40
codegen_flags: <defaults>
</compile_context>

<pallas_src>
import jax
import jax.numpy as jnp
from jax.experimental import pallas as pl
from jax.experimental.pallas import tpu as pltpu

# ----- problem sizes (small, consistent with the module) -----
B_GRAPHS = 2                 # graphs per block (the module's data batch)
NODES_PER_GRAPH = 8
N_BLK = B_GRAPHS * NODES_PER_GRAPH   # 16 nodes per block
IN_CH = 4                    # in_channels
HID = 8                      # hidden_channels
HEADS = 4                    # heads
OUT_CH = 3                   # out_channels
HC = HID * HEADS             # 32
NEG_SLOPE = 0.2              # GATConv default negative_slope

# ----- parameter-slab row offsets (static, compile-time constants) -----
R_W1 = 0                     # w1  [IN_CH, HC]
R_W2 = R_W1 + IN_CH          # w2  [HC, HC]
R_W3 = R_W2 + HC             # w3  [HC, HC]
R_A1 = R_W3 + HC             # a1  [HC, 2*HEADS] (block-diag att_dst|att_src), lanes 0:8
R_A2 = R_A1 + HC
R_A3 = R_A2 + HC
R_WFC = R_A3 + HC            # w_fc [HC, OUT_CH], lanes 0:3
R_B1 = R_WFC + HC            # biases, one row each
R_B2 = R_B1 + 1
R_B3 = R_B2 + 1
R_BFC = R_B3 + 1
SLAB_ROWS = R_BFC + 1        # 200 rows (multiple of 8), 32 lanes


# ---------------------------------------------------------------------------
# Fused kernel: gat1 -> relu -> gat2 -> relu -> gat3 -> relu -> mean-pool -> fc
# One grid step = one block of B_GRAPHS graphs.
# ---------------------------------------------------------------------------
def _fused_gat_kernel(x_ref, mask_ref, pool_ref, w_ref, out_ref, hbuf_ref):
    f32 = jnp.float32
    nb = mask_ref.shape[0]

    # Hoisted: additive mask broadcast over heads (reused by all 3 layers).
    neg_b = jnp.broadcast_to(mask_ref[...][None, :, :], (HEADS, nb, nb))

    def gat_layer(h, r_w, fin, r_a, r_b):
        # (1) wide per-node projection: ONE MXU matmul in the concat layout.
        w = w_ref[r_w:r_w + fin, :]                                # [fin, HC]
        xh = jnp.dot(h, w, preferred_element_type=f32)             # [nb, HC]

        # (2) attention scores: block-diagonal att matrix gives
        #     s[:, h]        = <x_i^(h), a_dst_h>
        #     s[:, HEADS+h]  = <x_j^(h), a_src_h>
        a = w_ref[r_a:r_a + HC, :]                                 # [HC, 32] (lanes 0:8 live)
        s = jnp.dot(xh, a, preferred_element_type=f32)             # [nb, 32]
        s_t = s.T                                                  # [32, nb] one small transpose
        s_dst = s_t[0:HEADS, :]                                    # [H, nb]   (destination i)
        s_src = s_t[HEADS:2 * HEADS, :]                            # [H, nb]   (source j)

        # (3) logits + LeakyReLU + masked softmax, batched over heads.
        e = s_dst[:, :, None] + s_src[:, None, :]                  # [H, nb, nb]
        e = jnp.where(e > 0.0, e, NEG_SLOPE * e)
        e = e + neg_b                                              # additive mask only
        e = e - jnp.max(e, axis=-1, keepdims=True)
        p = jnp.exp(e)                                             # masked entries underflow to 0
        attn = p / jnp.sum(p, axis=-1, keepdims=True)              # exact normalization

        # (4) per-head aggregation into the wide scratch (static lane slices,
        #     no cross-lane concat).
        for hh in range(HEADS):
            hbuf_ref[:, hh * HID:(hh + 1) * HID] = jnp.dot(
                attn[hh], xh[:, hh * HID:(hh + 1) * HID],
                preferred_element_type=f32)

        bias = w_ref[r_b:r_b + 1, :]                               # [1, HC]
        return jnp.maximum(hbuf_ref[...] + bias, 0.0)              # bias + ReLU, wide tile

    h = x_ref[...].astype(f32)                                     # [nb, IN_CH]
    h = gat_layer(h, R_W1, IN_CH, R_A1, R_B1)
    h = gat_layer(h, R_W2, HC, R_A2, R_B2)
    h = gat_layer(h, R_W3, HC, R_A3, R_B3)

    # global_mean_pool (segment-mean matrix) + final Linear, fused epilogue.
    pooled = jnp.dot(pool_ref[...], h, preferred_element_type=f32)  # [B, HC]
    w_fc = w_ref[R_WFC:R_WFC + HC, 0:OUT_CH]                        # [HC, OUT]
    b_fc = w_ref[R_BFC:R_BFC + 1, 0:OUT_CH]                         # [1, OUT]
    out_ref[...] = jnp.dot(pooled, w_fc, preferred_element_type=f32) + b_fc


# ---------------------------------------------------------------------------
# Wrapper: grid over graph-blocks ("parallel" -> shards across TensorCores),
# parameters resident as a single slab, 4 DMAs per step total.
# ---------------------------------------------------------------------------
def gat_classifier_forward(x, neg_mask, pool, slab):
    g, nb, _ = x.shape
    bg = pool.shape[1]
    return pl.pallas_call(
        _fused_gat_kernel,
        out_shape=jax.ShapeDtypeStruct((g, bg, OUT_CH), jnp.float32),
        grid=(g,),
        in_specs=[
            pl.BlockSpec((None, nb, IN_CH), lambda i: (i, 0, 0)),   # x        [G, nb, F]
            pl.BlockSpec((None, nb, nb), lambda i: (i, 0, 0)),      # mask     [G, nb, nb]
            pl.BlockSpec((None, bg, nb), lambda i: (i, 0, 0)),      # pool     [G, B, nb]
            pl.BlockSpec((SLAB_ROWS, HC), lambda i: (0, 0)),        # params   (resident)
        ],
        out_specs=pl.BlockSpec((None, bg, OUT_CH), lambda i: (i, 0, 0)),
        scratch_shapes=[pltpu.VMEM((nb, HC), jnp.float32)],         # wide layer buffer
        compiler_params=pltpu.CompilerParams(
            dimension_semantics=("parallel",)),
        # TODO(synk): for very large G, pack many graphs' logits into >=128-lane
        # output rows to make the final store lane-dense (negligible at this size).
    )(x, neg_mask, pool, slab)


# ---------------------------------------------------------------------------
# Parameters: structured (for the reference) + packed slab (for the kernel).
# ---------------------------------------------------------------------------
def init_params(key):
    ks = jax.random.split(key, 16)

    def dense(k, fin, fout):
        return jax.random.normal(k, (fin, fout), jnp.float32) * jnp.sqrt(2.0 / (fin + fout))

    def att(k):
        return jax.random.normal(k, (HEADS, HID), jnp.float32) * 0.1

    def bias(k, n):
        return jax.random.normal(k, (n,), jnp.float32) * 0.01

    return {
        "w1": dense(ks[0], IN_CH, HC), "ad1": att(ks[1]), "as1": att(ks[2]), "b1": bias(ks[3], HC),
        "w2": dense(ks[4], HC, HC), "ad2": att(ks[5]), "as2": att(ks[6]), "b2": bias(ks[7], HC),
        "w3": dense(ks[8], HC, HC), "ad3": att(ks[9]), "as3": att(ks[10]), "b3": bias(ks[11], HC),
        "w_fc": dense(ks[12], HC, OUT_CH), "b_fc": bias(ks[13], OUT_CH),
    }


def pack_slab(p):
    def att_block(a_dst, a_src):
        # blk[h*C + c, h]       = a_dst[h, c]
        # blk[h*C + c, H + h]   = a_src[h, c]
        blk = jnp.zeros((HC, 2 * HEADS), jnp.float32)
        for h in range(HEADS):
            blk = blk.at[h * HID:(h + 1) * HID, h].set(a_dst[h])
            blk = blk.at[h * HID:(h + 1) * HID, HEADS + h].set(a_src[h])
        return blk

    slab = jnp.zeros((SLAB_ROWS, HC), jnp.float32)
    slab = slab.at[R_W1:R_W1 + IN_CH, :].set(p["w1"])
    slab = slab.at[R_W2:R_W2 + HC, :].set(p["w2"])
    slab = slab.at[R_W3:R_W3 + HC, :].set(p["w3"])
    slab = slab.at[R_A1:R_A1 + HC, 0:2 * HEADS].set(att_block(p["ad1"], p["as1"]))
    slab = slab.at[R_A2:R_A2 + HC, 0:2 * HEADS].set(att_block(p["ad2"], p["as2"]))
    slab = slab.at[R_A3:R_A3 + HC, 0:2 * HEADS].set(att_block(p["ad3"], p["as3"]))
    slab = slab.at[R_WFC:R_WFC + HC, 0:OUT_CH].set(p["w_fc"])
    slab = slab.at[R_B1, :].set(p["b1"])
    slab = slab.at[R_B2, :].set(p["b2"])
    slab = slab.at[R_B3, :].set(p["b3"])
    slab = slab.at[R_BFC, 0:OUT_CH].set(p["b_fc"])
    return slab


# ---------------------------------------------------------------------------
# Graph construction (glue, plain JAX): directed ring + chord per graph,
# dense adjacency with self loops, additive mask, mean-pool matrix.
# ---------------------------------------------------------------------------
def build_block_graph():
    src, dst = [], []
    for g in range(B_GRAPHS):
        off = g * NODES_PER_GRAPH
        for i in range(NODES_PER_GRAPH):
            src.append(off + i)
            dst.append(off + (i + 1) % NODES_PER_GRAPH)
        src.append(off + 0)          # asymmetric chord 0 -> 3
        dst.append(off + 3)
    edge_index = jnp.array([src, dst], jnp.int32)           # [2, E]

    # adj[dst, src] = 1, plus self loops (GATConv default).
    adj = jnp.zeros((N_BLK, N_BLK), jnp.float32).at[edge_index[1], edge_index[0]].set(1.0)
    adj = jnp.maximum(adj, jnp.eye(N_BLK, dtype=jnp.float32))
    neg_mask = jnp.where(adj > 0.0, 0.0, jnp.float32(-1e30))

    batch = jnp.repeat(jnp.arange(B_GRAPHS, dtype=jnp.int32), NODES_PER_GRAPH)
    one_hot = (batch[None, :] == jnp.arange(B_GRAPHS)[:, None]).astype(jnp.float32)
    pool = one_hot / jnp.sum(one_hot, axis=1, keepdims=True)  # [B, N_BLK]
    return adj, neg_mask, pool


# ---------------------------------------------------------------------------
# Pure-JAX reference (same dense-mask GAT semantics) for a correctness check.
# ---------------------------------------------------------------------------
def gat_reference(x, adj, pool, p):
    hi = jax.lax.Precision.HIGHEST
    neg = jnp.where(adj > 0.0, 0.0, jnp.float32(-1e30))

    def layer(h, w, a_dst, a_src, b):
        xh = jnp.dot(h, w, precision=hi)                         # [N, HC]
        xh_h = xh.reshape(xh.shape[0], HEADS, HID)               # [N, H, C]
        s_dst = jnp.einsum("nhc,hc->nh", xh_h, a_dst, precision=hi)
        s_src = jnp.einsum("nhc,hc->nh", xh_h, a_src, precision=hi)
        e = s_dst[:, None, :] + s_src[None, :, :]                # [i, j, h]
        e = jnp.where(e > 0.0, e, NEG_SLOPE * e)
        e = e + neg[:, :, None]
        e = e - jnp.max(e, axis=1, keepdims=True)
        pr = jnp.exp(e)
        attn = pr / jnp.sum(pr, axis=1, keepdims=True)
        agg = jnp.einsum("ijh,jhc->ihc", attn, xh_h, precision=hi)
        return jnp.maximum(agg.reshape(xh.shape[0], HC) + b, 0.0)

    h = layer(x, p["w1"], p["ad1"], p["as1"], p["b1"])
    h = layer(h, p["w2"], p["ad2"], p["as2"], p["b2"])
    h = layer(h, p["w3"], p["ad3"], p["as3"], p["b3"])
    pooled = jnp.dot(pool, h, precision=hi)
    return jnp.dot(pooled, p["w_fc"], precision=hi) + p["b_fc"]


# ---------------------------------------------------------------------------
if __name__ == "__main__":
    key = jax.random.PRNGKey(0)
    k_x, k_p = jax.random.split(key)

    G = 4                                                   # graph-blocks per launch
    adj, neg_mask, pool = build_block_graph()
    x = jax.random.normal(k_x, (G, N_BLK, IN_CH), jnp.float32)
    neg_mask_b = jnp.tile(neg_mask[None], (G, 1, 1))
    pool_b = jnp.tile(pool[None], (G, 1, 1))

    params = init_params(k_p)
    slab = pack_slab(params)

    logits = gat_classifier_forward(x, neg_mask_b, pool_b, slab)
    logits = jax.block_until_ready(logits)

    assert logits.shape == (G, B_GRAPHS, OUT_CH)
    assert bool(jnp.all(jnp.isfinite(logits)))

    ref = jnp.stack([gat_reference(x[g], adj, pool, params) for g in range(G)])
    max_err = float(jnp.max(jnp.abs(logits - ref)))
    assert bool(jnp.allclose(logits, ref, rtol=2e-2, atol=2e-2)), max_err

    print("KERNEL_OK")
</pallas_src>

<mosaic_0001>
module attributes {stable_mosaic.version = 11 : i64} {
  func.func @_fused_gat_kernel(%arg0: i32, %arg1: memref<1x16x4xf32, #tpu.memory_space<vmem>>, %arg2: memref<1x16x16xf32, #tpu.memory_space<vmem>>, %arg3: memref<1x2x16xf32, #tpu.memory_space<vmem>>, %arg4: memref<200x32xf32, #tpu.memory_space<vmem>>, %arg5: memref<1x2x3xf32, #tpu.memory_space<vmem>>, %arg6: memref<16x32xf32, #tpu.memory_space<vmem>>) attributes {dimension_semantics = [#tpu.dimension_semantics<parallel>], iteration_bounds = array<i64: 4>, scalar_prefetch = 0 : i64, scratch_operands = 1 : i64, tpu.core_type = #tpu.core_type<tc>, window_params = [{transform_indices = @transform_0, window_bounds = array<i64: 1, 16, 4>}, {transform_indices = @transform_1, window_bounds = array<i64: 1, 16, 16>}, {transform_indices = @transform_2, window_bounds = array<i64: 1, 2, 16>}, {pipeline_mode = #tpu.pipeline_mode<synchronous>, transform_indices = @transform_3, window_bounds = array<i64: 200, 32>}, {transform_indices = @transform_4, window_bounds = array<i64: 1, 2, 3>}]} {
    %c0 = arith.constant 0 : index
    %c0_0 = arith.constant 0 : index
    %c0_1 = arith.constant 0 : index
    %0 = vector.load %arg2[%c0, %c0_0, %c0_1] : memref<1x16x16xf32, #tpu.memory_space<vmem>>, vector<1x16x16xf32>
    %1 = vector.shape_cast %0 : vector<1x16x16xf32> to vector<16x16xf32>
    %2 = vector.shape_cast %1 : vector<16x16xf32> to vector<1x16x16xf32>
    %3 = vector.shape_cast %2 : vector<1x16x16xf32> to vector<1x16x16xf32>
    %4 = vector.broadcast %3 : vector<1x16x16xf32> to vector<4x16x16xf32>
    %c0_2 = arith.constant 0 : index
    %c0_3 = arith.constant 0 : index
    %c0_4 = arith.constant 0 : index
    %5 = vector.load %arg1[%c0_2, %c0_3, %c0_4] : memref<1x16x4xf32, #tpu.memory_space<vmem>>, vector<1x16x4xf32>
    %6 = vector.shape_cast %5 : vector<1x16x4xf32> to vector<16x4xf32>
    %c0_5 = arith.constant 0 : index
    %c0_6 = arith.constant 0 : index
    %7 = vector.load %arg4[%c0_5, %c0_6] : memref<200x32xf32, #tpu.memory_space<vmem>>, vector<4x32xf32>
    %cst = arith.constant dense<0.000000e+00> : vector<16x32xf32>
    %8 = tpu.matmul %6, %7, %cst {dimension_numbers = #tpu.dot_dimension_numbers<[1], [0], [0], [1], [0, 0, 1, 1], [], []>} : vector<16x4xf32>, vector<4x32xf32>, vector<16x32xf32> -> vector<16x32xf32>
    %c68 = arith.constant 68 : index
    %c0_7 = arith.constant 0 : index
    %9 = vector.load %arg4[%c68, %c0_7] : memref<200x32xf32, #tpu.memory_space<vmem>>, vector<32x32xf32>
    %cst_8 = arith.constant dense<0.000000e+00> : vector<16x32xf32>
    %10 = tpu.matmul %8, %9, %cst_8 {dimension_numbers = #tpu.dot_dimension_numbers<[1], [0], [0], [1], [0, 0, 1, 1], [], []>} : vector<16x32xf32>, vector<32x32xf32>, vector<16x32xf32> -> vector<16x32xf32>
    %11 = tpu.transpose %10, [1, 0] : vector<16x32xf32> -> vector<32x16xf32>
    %12 = vector.extract_strided_slice %11 {offsets = [0, 0], sizes = [4, 16], strides = [1, 1]} : vector<32x16xf32> to vector<4x16xf32>
    %13 = vector.extract_strided_slice %11 {offsets = [4, 0], sizes = [4, 16], strides = [1, 1]} : vector<32x16xf32> to vector<4x16xf32>
    %14 = vector.shape_cast %12 : vector<4x16xf32> to vector<4x16x1xf32>
    %15 = vector.shape_cast %13 : vector<4x16xf32> to vector<4x1x16xf32>
    %16 = vector.broadcast %14 : vector<4x16x1xf32> to vector<4x16x16xf32>
    %17 = vector.broadcast %15 : vector<4x1x16xf32> to vector<4x16x16xf32>
    %18 = arith.addf %16, %17 : vector<4x16x16xf32>
    %cst_9 = arith.constant 0.000000e+00 : f32
    %19 = vector.broadcast %cst_9 : f32 to vector<4x16x16xf32>
    %20 = arith.cmpf ogt, %18, %19 : vector<4x16x16xf32>
    %cst_10 = arith.constant 2.000000e-01 : f32
    %21 = vector.broadcast %cst_10 : f32 to vector<4x16x16xf32>
    %22 = arith.mulf %21, %18 : vector<4x16x16xf32>
    %23 = arith.select %20, %18, %22 : vector<4x16x16xi1>, vector<4x16x16xf32>
    %24 = arith.addf %23, %4 : vector<4x16x16xf32>
    %cst_11 = arith.constant dense<0xFF800000> : vector<4x16xf32>
    %25 = vector.multi_reduction <maximumf>, %24, %cst_11 [2] : vector<4x16x16xf32> to vector<4x16xf32>
    %26 = vector.shape_cast %25 : vector<4x16xf32> to vector<4x16x1xf32>
    %27 = vector.broadcast %26 : vector<4x16x1xf32> to vector<4x16x16xf32>
    %28 = arith.subf %24, %27 : vector<4x16x16xf32>
    %29 = math.exp %28 : vector<4x16x16xf32>
    %cst_12 = arith.constant dense<0.000000e+00> : vector<4x16xf32>
    %30 = vector.multi_reduction <add>, %29, %cst_12 [2] : vector<4x16x16xf32> to vector<4x16xf32>
    %31 = vector.shape_cast %30 : vector<4x16xf32> to vector<4x16x1xf32>
    %32 = vector.broadcast %31 : vector<4x16x1xf32> to vector<4x16x16xf32>
    %33 = arith.divf %29, %32 : vector<4x16x16xf32>
    %34 = vector.extract_strided_slice %33 {offsets = [0, 0, 0], sizes = [1, 16, 16], strides = [1, 1, 1]} : vector<4x16x16xf32> to vector<1x16x16xf32>
    %35 = vector.shape_cast %34 : vector<1x16x16xf32> to vector<16x16xf32>
    %36 = vector.extract_strided_slice %8 {offsets = [0, 0], sizes = [16, 8], strides = [1, 1]} : vector<16x32xf32> to vector<16x8xf32>
    %cst_13 = arith.constant dense<0.000000e+00> : vector<16x8xf32>
    %37 = tpu.matmul %35, %36, %cst_13 {dimension_numbers = #tpu.dot_dimension_numbers<[1], [0], [0], [1], [0, 0, 1, 1], [], []>} : vector<16x16xf32>, vector<16x8xf32>, vector<16x8xf32> -> vector<16x8xf32>
    %c0_14 = arith.constant 0 : index
    %c0_15 = arith.constant 0 : index
    %38 = vector.load %arg6[%c0_14, %c0_15] : memref<16x32xf32, #tpu.memory_space<vmem>>, vector<16x8xf32>
    tpu.vector_store %arg6[%c0_14, %c0_15], %37 {strides = array<i32>} : memref<16x32xf32, #tpu.memory_space<vmem>>, vector<16x8xf32>,
    %39 = vector.extract_strided_slice %33 {offsets = [1, 0, 0], sizes = [1, 16, 16], strides = [1, 1, 1]} : vector<4x16x16xf32> to vector<1x16x16xf32>
    %40 = vector.shape_cast %39 : vector<1x16x16xf32> to vector<16x16xf32>
    %41 = vector.extract_strided_slice %8 {offsets = [0, 8], sizes = [16, 8], strides = [1, 1]} : vector<16x32xf32> to vector<16x8xf32>
    %cst_16 = arith.constant dense<0.000000e+00> : vector<16x8xf32>
    %42 = tpu.matmul %40, %41, %cst_16 {dimension_numbers = #tpu.dot_dimension_numbers<[1], [0], [0], [1], [0, 0, 1, 1], [], []>} : vector<16x16xf32>, vector<16x8xf32>, vector<16x8xf32> -> vector<16x8xf32>
    %c0_17 = arith.constant 0 : index
    %c8 = arith.constant 8 : index
    %43 = vector.load %arg6[%c0_17, %c8] : memref<16x32xf32, #tpu.memory_space<vmem>>, vector<16x8xf32>
    tpu.vector_store %arg6[%c0_17, %c8], %42 {strides = array<i32>} : memref<16x32xf32, #tpu.memory_space<vmem>>, vector<16x8xf32>,
    %44 = vector.extract_strided_slice %33 {offsets = [2, 0, 0], sizes = [1, 16, 16], strides = [1, 1, 1]} : vector<4x16x16xf32> to vector<1x16x16xf32>
    %45 = vector.shape_cast %44 : vector<1x16x16xf32> to vector<16x16xf32>
    %46 = vector.extract_strided_slice %8 {offsets = [0, 16], sizes = [16, 8], strides = [1, 1]} : vector<16x32xf32> to vector<16x8xf32>
    %cst_18 = arith.constant dense<0.000000e+00> : vector<16x8xf32>
    %47 = tpu.matmul %45, %46, %cst_18 {dimension_numbers = #tpu.dot_dimension_numbers<[1], [0], [0], [1], [0, 0, 1, 1], [], []>} : vector<16x16xf32>, vector<16x8xf32>, vector<16x8xf32> -> vector<16x8xf32>
    %c0_19 = arith.constant 0 : index
    %c16 = arith.constant 16 : index
    %48 = vector.load %arg6[%c0_19, %c16] : memref<16x32xf32, #tpu.memory_space<vmem>>, vector<16x8xf32>
    tpu.vector_store %arg6[%c0_19, %c16], %47 {strides = array<i32>} : memref<16x32xf32, #tpu.memory_space<vmem>>, vector<16x8xf32>,
    %49 = vector.extract_strided_slice %33 {offsets = [3, 0, 0], sizes = [1, 16, 16], strides = [1, 1, 1]} : vector<4x16x16xf32> to vector<1x16x16xf32>
    %50 = vector.shape_cast %49 : vector<1x16x16xf32> to vector<16x16xf32>
    %51 = vector.extract_strided_slice %8 {offsets = [0, 24], sizes = [16, 8], strides = [1, 1]} : vector<16x32xf32> to vector<16x8xf32>
    %cst_20 = arith.constant dense<0.000000e+00> : vector<16x8xf32>
    %52 = tpu.matmul %50, %51, %cst_20 {dimension_numbers = #tpu.dot_dimension_numbers<[1], [0], [0], [1], [0, 0, 1, 1], [], []>} : vector<16x16xf32>, vector<16x8xf32>, vector<16x8xf32> -> vector<16x8xf32>
    %c0_21 = arith.constant 0 : index
    %c24 = arith.constant 24 : index
    %53 = vector.load %arg6[%c0_21, %c24] : memref<16x32xf32, #tpu.memory_space<vmem>>, vector<16x8xf32>
    tpu.vector_store %arg6[%c0_21, %c24], %52 {strides = array<i32>} : memref<16x32xf32, #tpu.memory_space<vmem>>, vector<16x8xf32>,
    %c196 = arith.constant 196 : index
    %c0_22 = arith.constant 0 : index
    %54 = vector.load %arg4[%c196, %c0_22] : memref<200x32xf32, #tpu.memory_space<vmem>>, vector<1x32xf32>
    %c0_23 = arith.constant 0 : index
    %c0_24 = arith.constant 0 : index
    %55 = vector.load %arg6[%c0_23, %c0_24] : memref<16x32xf32, #tpu.memory_space<vmem>>, vector<16x32xf32>
    %56 = vector.broadcast %54 : vector<1x32xf32> to vector<16x32xf32>
    %57 = arith.addf %55, %56 : vector<16x32xf32>
    %cst_25 = arith.constant 0.000000e+00 : f32
    %58 = vector.broadcast %cst_25 : f32 to vector<16x32xf32>
    %59 = arith.maximumf %57, %58 : vector<16x32xf32>
    %c4 = arith.constant 4 : index
    %c0_26 = arith.constant 0 : index
    %60 = vector.load %arg4[%c4, %c0_26] : memref<200x32xf32, #tpu.memory_space<vmem>>, vector<32x32xf32>
    %cst_27 = arith.constant dense<0.000000e+00> : vector<16x32xf32>
    %61 = tpu.matmul %59, %60, %cst_27 {dimension_numbers = #tpu.dot_dimension_numbers<[1], [0], [0], [1], [0, 0, 1, 1], [], []>} : vector<16x32xf32>, vector<32x32xf32>, vector<16x32xf32> -> vector<16x32xf32>
    %c100 = arith.constant 100 : index
    %c0_28 = arith.constant 0 : index
    %62 = vector.load %arg4[%c100, %c0_28] : memref<200x32xf32, #tpu.memory_space<vmem>>, vector<32x32xf32>
    %cst_29 = arith.constant dense<0.000000e+00> : vector<16x32xf32>
    %63 = tpu.matmul %61, %62, %cst_29 {dimension_numbers = #tpu.dot_dimension_numbers<[1], [0], [0], [1], [0, 0, 1, 1], [], []>} : vector<16x32xf32>, vector<32x32xf32>, vector<16x32xf32> -> vector<16x32xf32>
    %64 = tpu.transpose %63, [1, 0] : vector<16x32xf32> -> vector<32x16xf32>
    %65 = vector.extract_strided_slice %64 {offsets = [0, 0], sizes = [4, 16], strides = [1, 1]} : vector<32x16xf32> to vector<4x16xf32>
    %66 = vector.extract_strided_slice %64 {offsets = [4, 0], sizes = [4, 16], strides = [1, 1]} : vector<32x16xf32> to vector<4x16xf32>
    %67 = vector.shape_cast %65 : vector<4x16xf32> to vector<4x16x1xf32>
    %68 = vector.shape_cast %66 : vector<4x16xf32> to vector<4x1x16xf32>
    %69 = vector.broadcast %67 : vector<4x16x1xf32> to vector<4x16x16xf32>
    %70 = vector.broadcast %68 : vector<4x1x16xf32> to vector<4x16x16xf32>
    %71 = arith.addf %69, %70 : vector<4x16x16xf32>
    %cst_30 = arith.constant 0.000000e+00 : f32
    %72 = vector.broadcast %cst_30 : f32 to vector<4x16x16xf32>
    %73 = arith.cmpf ogt, %71, %72 : vector<4x16x16xf32>
    %cst_31 = arith.constant 2.000000e-01 : f32
    %74 = vector.broadcast %cst_31 : f32 to vector<4x16x16xf32>
    %75 = arith.mulf %74, %71 : vector<4x16x16xf32>
    %76 = arith.select %73, %71, %75 : vector<4x16x16xi1>, vector<4x16x16xf32>
    %77 = arith.addf %76, %4 : vector<4x16x16xf32>
    %cst_32 = arith.constant dense<0xFF800000> : vector<4x16xf32>
    %78 = vector.multi_reduction <maximumf>, %77, %cst_32 [2] : vector<4x16x16xf32> to vector<4x16xf32>
    %79 = vector.shape_cast %78 : vector<4x16xf32> to vector<4x16x1xf32>
    %80 = vector.broadcast %79 : vector<4x16x1xf32> to vector<4x16x16xf32>
    %81 = arith.subf %77, %80 : vector<4x16x16xf32>
    %82 = math.exp %81 : vector<4x16x16xf32>
    %cst_33 = arith.constant dense<0.000000e+00> : vector<4x16xf32>
    %83 = vector.multi_reduction <add>, %82, %cst_33 [2] : vector<4x16x16xf32> to vector<4x16xf32>
    %84 = vector.shape_cast %83 : vector<4x16xf32> to vector<4x16x1xf32>
    %85 = vector.broadcast %84 : vector<4x16x1xf32> to vector<4x16x16xf32>
    %86 = arith.divf %82, %85 : vector<4x16x16xf32>
    %87 = vector.extract_strided_slice %86 {offsets = [0, 0, 0], sizes = [1, 16, 16], strides = [1, 1, 1]} : vector<4x16x16xf32> to vector<1x16x16xf32>
    %88 = vector.shape_cast %87 : vector<1x16x16xf32> to vector<16x16xf32>
    %89 = vector.extract_strided_slice %61 {offsets = [0, 0], sizes = [16, 8], strides = [1, 1]} : vector<16x32xf32> to vector<16x8xf32>
    %cst_34 = arith.constant dense<0.000000e+00> : vector<16x8xf32>
    %90 = tpu.matmul %88, %89, %cst_34 {dimension_numbers = #tpu.dot_dimension_numbers<[1], [0], [0], [1], [0, 0, 1, 1], [], []>} : vector<16x16xf32>, vector<16x8xf32>, vector<16x8xf32> -> vector<16x8xf32>
    %c0_35 = arith.constant 0 : index
    %c0_36 = arith.constant 0 : index
    %91 = vector.load %arg6[%c0_35, %c0_36] : memref<16x32xf32, #tpu.memory_space<vmem>>, vector<16x8xf32>
    tpu.vector_store %arg6[%c0_35, %c0_36], %90 {strides = array<i32>} : memref<16x32xf32, #tpu.memory_space<vmem>>, vector<16x8xf32>,
    %92 = vector.extract_strided_slice %86 {offsets = [1, 0, 0], sizes = [1, 16, 16], strides = [1, 1, 1]} : vector<4x16x16xf32> to vector<1x16x16xf32>
    %93 = vector.shape_cast %92 : vector<1x16x16xf32> to vector<16x16xf32>
    %94 = vector.extract_strided_slice %61 {offsets = [0, 8], sizes = [16, 8], strides = [1, 1]} : vector<16x32xf32> to vector<16x8xf32>
    %cst_37 = arith.constant dense<0.000000e+00> : vector<16x8xf32>
    %95 = tpu.matmul %93, %94, %cst_37 {dimension_numbers = #tpu.dot_dimension_numbers<[1], [0], [0], [1], [0, 0, 1, 1], [], []>} : vector<16x16xf32>, vector<16x8xf32>, vector<16x8xf32> -> vector<16x8xf32>
    %c0_38 = arith.constant 0 : index
    %c8_39 = arith.constant 8 : index
    %96 = vector.load %arg6[%c0_38, %c8_39] : memref<16x32xf32, #tpu.memory_space<vmem>>, vector<16x8xf32>
    tpu.vector_store %arg6[%c0_38, %c8_39], %95 {strides = array<i32>} : memref<16x32xf32, #tpu.memory_space<vmem>>, vector<16x8xf32>,
    %97 = vector.extract_strided_slice %86 {offsets = [2, 0, 0], sizes = [1, 16, 16], strides = [1, 1, 1]} : vector<4x16x16xf32> to vector<1x16x16xf32>
    %98 = vector.shape_cast %97 : vector<1x16x16xf32> to vector<16x16xf32>
    %99 = vector.extract_strided_slice %61 {offsets = [0, 16], sizes = [16, 8], strides = [1, 1]} : vector<16x32xf32> to vector<16x8xf32>
    %cst_40 = arith.constant dense<0.000000e+00> : vector<16x8xf32>
    %100 = tpu.matmul %98, %99, %cst_40 {dimension_numbers = #tpu.dot_dimension_numbers<[1], [0], [0], [1], [0, 0, 1, 1], [], []>} : vector<16x16xf32>, vector<16x8xf32>, vector<16x8xf32> -> vector<16x8xf32>
    %c0_41 = arith.constant 0 : index
    %c16_42 = arith.constant 16 : index
    %101 = vector.load %arg6[%c0_41, %c16_42] : memref<16x32xf32, #tpu.memory_space<vmem>>, vector<16x8xf32>
    tpu.vector_store %arg6[%c0_41, %c16_42], %100 {strides = array<i32>} : memref<16x32xf32, #tpu.memory_space<vmem>>, vector<16x8xf32>,
    %102 = vector.extract_strided_slice %86 {offsets = [3, 0, 0], sizes = [1, 16, 16], strides = [1, 1, 1]} : vector<4x16x16xf32> to vector<1x16x16xf32>
    %103 = vector.shape_cast %102 : vector<1x16x16xf32> to vector<16x16xf32>
    %104 = vector.extract_strided_slice %61 {offsets = [0, 24], sizes = [16, 8], strides = [1, 1]} : vector<16x32xf32> to vector<16x8xf32>
    %cst_43 = arith.constant dense<0.000000e+00> : vector<16x8xf32>
    %105 = tpu.matmul %103, %104, %cst_43 {dimension_numbers = #tpu.dot_dimension_numbers<[1], [0], [0], [1], [0, 0, 1, 1], [], []>} : vector<16x16xf32>, vector<16x8xf32>, vector<16x8xf32> -> vector<16x8xf32>
    %c0_44 = arith.constant 0 : index
    %c24_45 = arith.constant 24 : index
    %106 = vector.load %arg6[%c0_44, %c24_45] : memref<16x32xf32, #tpu.memory_space<vmem>>, vector<16x8xf32>
    tpu.vector_store %arg6[%c0_44, %c24_45], %105 {strides = array<i32>} : memref<16x32xf32, #tpu.memory_space<vmem>>, vector<16x8xf32>,
    %c197 = arith.constant 197 : index
    %c0_46 = arith.constant 0 : index
    %107 = vector.load %arg4[%c197, %c0_46] : memref<200x32xf32, #tpu.memory_space<vmem>>, vector<1x32xf32>
    %c0_47 = arith.constant 0 : index
    %c0_48 = arith.constant 0 : index
    %108 = vector.load %arg6[%c0_47, %c0_48] : memref<16x32xf32, #tpu.memory_space<vmem>>, vector<16x32xf32>
    %109 = vector.broadcast %107 : vector<1x32xf32> to vector<16x32xf32>
    %110 = arith.addf %108, %109 : vector<16x32xf32>
    %cst_49 = arith.constant 0.000000e+00 : f32
    %111 = vector.broadcast %cst_49 : f32 to vector<16x32xf32>
    %112 = arith.maximumf %110, %111 : vector<16x32xf32>
    %c36 = arith.constant 36 : index
    %c0_50 = arith.constant 0 : index
    %113 = vector.load %arg4[%c36, %c0_50] : memref<200x32xf32, #tpu.memory_space<vmem>>, vector<32x32xf32>
    %cst_51 = arith.constant dense<0.000000e+00> : vector<16x32xf32>
    %114 = tpu.matmul %112, %113, %cst_51 {dimension_numbers = #tpu.dot_dimension_numbers<[1], [0], [0], [1], [0, 0, 1, 1], [], []>} : vector<16x32xf32>, vector<32x32xf32>, vector<16x32xf32> -> vector<16x32xf32>
    %c132 = arith.constant 132 : index
    %c0_52 = arith.constant 0 : index
    %115 = vector.load %arg4[%c132, %c0_52] : memref<200x32xf32, #tpu.memory_space<vmem>>, vector<32x32xf32>
    %cst_53 = arith.constant dense<0.000000e+00> : vector<16x32xf32>
    %116 = tpu.matmul %114, %115, %cst_53 {dimension_numbers = #tpu.dot_dimension_numbers<[1], [0], [0], [1], [0, 0, 1, 1], [], []>} : vector<16x32xf32>, vector<32x32xf32>, vector<16x32xf32> -> vector<16x32xf32>
    %117 = tpu.transpose %116, [1, 0] : vector<16x32xf32> -> vector<32x16xf32>
    %118 = vector.extract_strided_slice %117 {offsets = [0, 0], sizes = [4, 16], strides = [1, 1]} : vector<32x16xf32> to vector<4x16xf32>
    %119 = vector.extract_strided_slice %117 {offsets = [4, 0], sizes = [4, 16], strides = [1, 1]} : vector<32x16xf32> to vector<4x16xf32>
    %120 = vector.shape_cast %118 : vector<4x16xf32> to vector<4x16x1xf32>
    %121 = vector.shape_cast %119 : vector<4x16xf32> to vector<4x1x16xf32>
    %122 = vector.broadcast %120 : vector<4x16x1xf32> to vector<4x16x16xf32>
    %123 = vector.broadcast %121 : vector<4x1x16xf32> to vector<4x16x16xf32>
    %124 = arith.addf %122, %123 : vector<4x16x16xf32>
    %cst_54 = arith.constant 0.000000e+00 : f32
    %125 = vector.broadcast %cst_54 : f32 to vector<4x16x16xf32>
    %126 = arith.cmpf ogt, %124, %125 : vector<4x16x16xf32>
    %cst_55 = arith.constant 2.000000e-01 : f32
    %127 = vector.broadcast %cst_55 : f32 to vector<4x16x16xf32>
    %128 = arith.mulf %127, %124 : vector<4x16x16xf32>
    %129 = arith.select %126, %124, %128 : vector<4x16x16xi1>, vector<4x16x16xf32>
    %130 = arith.addf %129, %4 : vector<4x16x16xf32>
    %cst_56 = arith.constant dense<0xFF800000> : vector<4x16xf32>
    %131 = vector.multi_reduction <maximumf>, %130, %cst_56 [2] : vector<4x16x16xf32> to vector<4x16xf32>
    %132 = vector.shape_cast %131 : vector<4x16xf32> to vector<4x16x1xf32>
    %133 = vector.broadcast %132 : vector<4x16x1xf32> to vector<4x16x16xf32>
    %134 = arith.subf %130, %133 : vector<4x16x16xf32>
    %135 = math.exp %134 : vector<4x16x16xf32>
    %cst_57 = arith.constant dense<0.000000e+00> : vector<4x16xf32>
    %136 = vector.multi_reduction <add>, %135, %cst_57 [2] : vector<4x16x16xf32> to vector<4x16xf32>
    %137 = vector.shape_cast %136 : vector<4x16xf32> to vector<4x16x1xf32>
    %138 = vector.broadcast %137 : vector<4x16x1xf32> to vector<4x16x16xf32>
    %139 = arith.divf %135, %138 : vector<4x16x16xf32>
    %140 = vector.extract_strided_slice %139 {offsets = [0, 0, 0], sizes = [1, 16, 16], strides = [1, 1, 1]} : vector<4x16x16xf32> to vector<1x16x16xf32>
    %141 = vector.shape_cast %140 : vector<1x16x16xf32> to vector<16x16xf32>
    %142 = vector.extract_strided_slice %114 {offsets = [0, 0], sizes = [16, 8], strides = [1, 1]} : vector<16x32xf32> to vector<16x8xf32>
    %cst_58 = arith.constant dense<0.000000e+00> : vector<16x8xf32>
    %143 = tpu.matmul %141, %142, %cst_58 {dimension_numbers = #tpu.dot_dimension_numbers<[1], [0], [0], [1], [0, 0, 1, 1], [], []>} : vector<16x16xf32>, vector<16x8xf32>, vector<16x8xf32> -> vector<16x8xf32>
    %c0_59 = arith.constant 0 : index
    %c0_60 = arith.constant 0 : index
    %144 = vector.load %arg6[%c0_59, %c0_60] : memref<16x32xf32, #tpu.memory_space<vmem>>, vector<16x8xf32>
    tpu.vector_store %arg6[%c0_59, %c0_60], %143 {strides = array<i32>} : memref<16x32xf32, #tpu.memory_space<vmem>>, vector<16x8xf32>,
    %145 = vector.extract_strided_slice %139 {offsets = [1, 0, 0], sizes = [1, 16, 16], strides = [1, 1, 1]} : vector<4x16x16xf32> to vector<1x16x16xf32>
    %146 = vector.shape_cast %145 : vector<1x16x16xf32> to vector<16x16xf32>
    %147 = vector.extract_strided_slice %114 {offsets = [0, 8], sizes = [16, 8], strides = [1, 1]} : vector<16x32xf32> to vector<16x8xf32>
    %cst_61 = arith.constant dense<0.000000e+00> : vector<16x8xf32>
    %148 = tpu.matmul %146, %147, %cst_61 {dimension_numbers = #tpu.dot_dimension_numbers<[1], [0], [0], [1], [0, 0, 1, 1], [], []>} : vector<16x16xf32>, vector<16x8xf32>, vector<16x8xf32> -> vector<16x8xf32>
    %c0_62 = arith.constant 0 : index
    %c8_63 = arith.constant 8 : index
    %149 = vector.load %arg6[%c0_62, %c8_63] : memref<16x32xf32, #tpu.memory_space<vmem>>, vector<16x8xf32>
    tpu.vector_store %arg6[%c0_62, %c8_63], %148 {strides = array<i32>} : memref<16x32xf32, #tpu.memory_space<vmem>>, vector<16x8xf32>,
    %150 = vector.extract_strided_slice %139 {offsets = [2, 0, 0], sizes = [1, 16, 16], strides = [1, 1, 1]} : vector<4x16x16xf32> to vector<1x16x16xf32>
    %151 = vector.shape_cast %150 : vector<1x16x16xf32> to vector<16x16xf32>
    %152 = vector.extract_strided_slice %114 {offsets = [0, 16], sizes = [16, 8], strides = [1, 1]} : vector<16x32xf32> to vector<16x8xf32>
    %cst_64 = arith.constant dense<0.000000e+00> : vector<16x8xf32>
    %153 = tpu.matmul %151, %152, %cst_64 {dimension_numbers = #tpu.dot_dimension_numbers<[1], [0], [0], [1], [0, 0, 1, 1], [], []>} : vector<16x16xf32>, vector<16x8xf32>, vector<16x8xf32> -> vector<16x8xf32>
    %c0_65 = arith.constant 0 : index
    %c16_66 = arith.constant 16 : index
    %154 = vector.load %arg6[%c0_65, %c16_66] : memref<16x32xf32, #tpu.memory_space<vmem>>, vector<16x8xf32>
    tpu.vector_store %arg6[%c0_65, %c16_66], %153 {strides = array<i32>} : memref<16x32xf32, #tpu.memory_space<vmem>>, vector<16x8xf32>,
    %155 = vector.extract_strided_slice %139 {offsets = [3, 0, 0], sizes = [1, 16, 16], strides = [1, 1, 1]} : vector<4x16x16xf32> to vector<1x16x16xf32>
    %156 = vector.shape_cast %155 : vector<1x16x16xf32> to vector<16x16xf32>
    %157 = vector.extract_strided_slice %114 {offsets = [0, 24], sizes = [16, 8], strides = [1, 1]} : vector<16x32xf32> to vector<16x8xf32>
    %cst_67 = arith.constant dense<0.000000e+00> : vector<16x8xf32>
    %158 = tpu.matmul %156, %157, %cst_67 {dimension_numbers = #tpu.dot_dimension_numbers<[1], [0], [0], [1], [0, 0, 1, 1], [], []>} : vector<16x16xf32>, vector<16x8xf32>, vector<16x8xf32> -> vector<16x8xf32>
    %c0_68 = arith.constant 0 : index
    %c24_69 = arith.constant 24 : index
    %159 = vector.load %arg6[%c0_68, %c24_69] : memref<16x32xf32, #tpu.memory_space<vmem>>, vector<16x8xf32>
    tpu.vector_store %arg6[%c0_68, %c24_69], %158 {strides = array<i32>} : memref<16x32xf32, #tpu.memory_space<vmem>>, vector<16x8xf32>,
    %c198 = arith.constant 198 : index
    %c0_70 = arith.constant 0 : index
    %160 = vector.load %arg4[%c198, %c0_70] : memref<200x32xf32, #tpu.memory_space<vmem>>, vector<1x32xf32>
    %c0_71 = arith.constant 0 : index
    %c0_72 = arith.constant 0 : index
    %161 = vector.load %arg6[%c0_71, %c0_72] : memref<16x32xf32, #tpu.memory_space<vmem>>, vector<16x32xf32>
    %162 = vector.broadcast %160 : vector<1x32xf32> to vector<16x32xf32>
    %163 = arith.addf %161, %162 : vector<16x32xf32>
    %cst_73 = arith.constant 0.000000e+00 : f32
    %164 = vector.broadcast %cst_73 : f32 to vector<16x32xf32>
    %165 = arith.maximumf %163, %164 : vector<16x32xf32>
    %c0_74 = arith.constant 0 : index
    %c0_75 = arith.constant 0 : index
    %c0_76 = arith.constant 0 : index
    %166 = vector.load %arg3[%c0_74, %c0_75, %c0_76] : memref<1x2x16xf32, #tpu.memory_space<vmem>>, vector<1x2x16xf32>
    %167 = vector.shape_cast %166 : vector<1x2x16xf32> to vector<2x16xf32>
    %cst_77 = arith.constant dense<0.000000e+00> : vector<2x32xf32>
    %168 = tpu.matmul %167, %165, %cst_77 {dimension_numbers = #tpu.dot_dimension_numbers<[1], [0], [0], [1], [0, 0, 1, 1], [], []>} : vector<2x16xf32>, vector<16x32xf32>, vector<2x32xf32> -> vector<2x32xf32>
    %c164 = arith.constant 164 : index
    %c0_78 = arith.constant 0 : index
    %169 = vector.load %arg4[%c164, %c0_78] : memref<200x32xf32, #tpu.memory_space<vmem>>, vector<32x3xf32>
    %c199 = arith.constant 199 : index
    %c0_79 = arith.constant 0 : index
    %170 = vector.load %arg4[%c199, %c0_79] : memref<200x32xf32, #tpu.memory_space<vmem>>, vector<1x3xf32>
    %cst_80 = arith.constant dense<0.000000e+00> : vector<2x3xf32>
    %171 = tpu.matmul %168, %169, %cst_80 {dimension_numbers = #tpu.dot_dimension_numbers<[1], [0], [0], [1], [0, 0, 1, 1], [], []>} : vector<2x32xf32>, vector<32x3xf32>, vector<2x3xf32> -> vector<2x3xf32>
    %172 = vector.broadcast %170 : vector<1x3xf32> to vector<2x3xf32>
    %173 = arith.addf %171, %172 : vector<2x3xf32>
    %c0_81 = arith.constant 0 : index
    %c0_82 = arith.constant 0 : index
    %c0_83 = arith.constant 0 : index
    %174 = vector.load %arg5[%c0_81, %c0_82, %c0_83] : memref<1x2x3xf32, #tpu.memory_space<vmem>>, vector<1x2x3xf32>
    %175 = vector.shape_cast %174 : vector<1x2x3xf32> to vector<2x3xf32>
    %176 = vector.shape_cast %173 : vector<2x3xf32> to vector<1x2x3xf32>
    tpu.vector_store %arg5[%c0_81, %c0_82, %c0_83], %176 {strides = array<i32>} : memref<1x2x3xf32, #tpu.memory_space<vmem>>, vector<1x2x3xf32>,
    return
  }
  func.func @transform_0(%arg0: i32) -> (i32, i32, i32) {
    %c0_i32 = arith.constant 0 : i32
    %c0_i32_0 = arith.constant 0 : i32
    %c0_i32_1 = arith.constant 0 : i32
    return %arg0, %c0_i32, %c0_i32_0 : i32, i32, i32
  }
  func.func @transform_1(%arg0: i32) -> (i32, i32, i32) {
    %c0_i32 = arith.constant 0 : i32
    %c0_i32_0 = arith.constant 0 : i32
    %c0_i32_1 = arith.constant 0 : i32
    return %arg0, %c0_i32, %c0_i32_0 : i32, i32, i32
  }
  func.func @transform_2(%arg0: i32) -> (i32, i32, i32) {
    %c0_i32 = arith.constant 0 : i32
    %c0_i32_0 = arith.constant 0 : i32
    %c0_i32_1 = arith.constant 0 : i32
    return %arg0, %c0_i32, %c0_i32_0 : i32, i32, i32
  }
  func.func @transform_3(%arg0: i32) -> (i32, i32) {
    %c0_i32 = arith.constant 0 : i32
    %c0_i32_0 = arith.constant 0 : i32
    %c0_i32_1 = arith.constant 0 : i32
    return %c0_i32, %c0_i32_0 : i32, i32
  }
  func.func @transform_4(%arg0: i32) -> (i32, i32, i32) {
    %c0_i32 = arith.constant 0 : i32
    %c0_i32_0 = arith.constant 0 : i32
    %c0_i32_1 = arith.constant 0 : i32
    return %arg0, %c0_i32, %c0_i32_0 : i32, i32, i32
  }
}

</mosaic_0001>

<bundles_post_ra>
// kernel: tpu_custom_call.1
= control target key start
LH: loop header
LB: loop body
LE: loop exit
PB: predicated region body
PF: predicated region fallthrough
CT: control target
= control target key end

     0   :  { %s3505_s15 = smov 0   ;;  %s3858_s0 = inlined_call_operand.vmem [shape: f32[4,16,4], index: 0, kind: input, shape index: {}]   ;;  %s3859_s1 = inlined_call_operand.vmem [shape: f32[4,16,16], index: 1, kind: input, shape index: {}]   ;;  %s3860_s2 = inlined_call_operand.vmem [shape: f32[4,2,16], index: 2, kind: input, shape index: {}]   ;;  %s3861_s3 = inlined_call_operand.vmem [shape: f32[200,32], index: 3, kind: input, shape index: {}]   ;;  %s3862_s4 = inlined_call_operand.vmem [shape: f32[4,2,3], index: 4, kind: output, shape index: {}]  }
   0x1 LB: > { %s2895_s16 = sadd.s32 4294967295, %s3468_s15   ;;  %p2899_p0 = scmp.ge.s32.totalorder %s3468_s15, 1  ;;  %s3468_s15 = sphi %s3505_s15, %s14_s15  }
   0x2   : > { %p181_p1 = scmp.lt.s32.totalorder %s3468_s15, 5 }
   0x4   : > { %p182_p2 = pnand %p2899_p0, %p181_p1 }
   0x5   : > { %v237_v0 = vld [vmem:[%s3861_s3] sm:$0xf] (!%p182_p2)  ;;  %vm245_vm0 = vcmask (!%p182_p2), 1043456   ;;  %p215_p3 = scmp.lt.s32.totalorder (!%p182_p2), %s2895_s16, 3  ;;  %v324_v1 = vld [vmem:[%s3861_s3 + $0x44] sm:$0xff] (!%p182_p2)  ;;  %v325_v2 = vld [vmem:[%s3861_s3 + $0x4c] sm:$0xff] (!%p182_p2)  ;;  %v442_v15 = vlaneseq (!%p182_p2) }
   0x6   : > { %185 = sbr.rel (%p182_p2) target bundleno = 4627 (0x1213), region = 36  ;;  %3042 = vmatprep.subr.msk.mxu1 (!%p182_p2), %vm245_vm0, %v237_v0  ;;  %v3204_v3 = vpack.c.bf16 (!%p182_p2), %v325_v2, %v324_v1  ;;  %v326_v4 = vld [vmem:[%s3861_s3 + $0x54] sm:$0xff] (!%p182_p2)  ;;  %v327_v5 = vld [vmem:[%s3861_s3 + $0x5c] sm:$0xff] (!%p182_p2)  ;;  %vm238_vm1 = vcmask (!%p182_p2), 31744   ;;  %vm328_vm2 = vcmask (!%p182_p2), 261120   ;;  %vm572_vm5 = vcmask (!%p182_p2), 130048  }
   0x7   : > { %3043 = vmatpush3.msk.msra.mxu1 (!%p182_p2), %vm245_vm0, %v237_v0  ;;  %v3208_v7 = vpack.c.bf16 (!%p182_p2), %v327_v5, %v326_v4  ;;  %v443_v16 = vshrl.u32 (!%p182_p2), %v442_v15, 7  ;;  %v3470_v26 = vmov (!%p182_p2), 1966171168   ;;  %s3471_s8 = smov (!%p182_p2), 112   ;;  %s3472_s9 = smov (!%p182_p2), 120   ;;  %vm742_vm12 = vcmask (!%p182_p2), 64512  }
   0x8   : > { %3205 = vmatprep.subr.bf16.mxu1 (!%p182_p2), %v3204_v3  ;;  %v489_v27 = vunpack.c.l.s4 (!%p182_p2), %v3470_v26  ;;  %s3473_s10 = smov (!%p182_p2), 104   ;;  %s3474_s11 = smov (!%p182_p2), 16   ;;  %vm840_vm13 = vcmask (!%p182_p2), 130112   ;;  %vm938_vm14 = vcmask (!%p182_p2), 195712   ;;  %vm1036_vm15 = vcmask (!%p182_p2), 261312  }
   0x9   : > { %v3540_v17 = vsub.s32 (!%p182_p2), 0, %v443_v16  ;;  %v3542_v18 = vsub.s32 (!%p182_p2), 1, %v443_v16  ;;  %v3546_v22 = vsub.s32 (!%p182_p2), 2, %v443_v16  ;;  %v3549_v24 = vsub.s32 (!%p182_p2), 3, %v443_v16  ;;  %s3475_s12 = smov (!%p182_p2), 8   ;;  %s3476_s23 = smov (!%p182_p2), 24  }
   0xa   : > { %v490_v28 = vunpack.c.0.s8 (!%p182_p2), %v489_v27 }
   0xc   : > { %v3552_v30 = vsub.s32 (!%p182_p2), %v490_v28, %v443_v16 }
   0xd   : > { %s3864_s16 = smov (!%p215_p3, %s2895_s16), 3 }
   0xe   : > { %s2951_s27 = sshll.u32 %s3864_s16, 4  ;;  %s2904_s20 = sshll.u32 %s3864_s16, 1 }
   0xf   : > { %s219_s30 = scalar_lea.vmem %s3858_s0, %s2951_s27  ;;  %s3562_s7 = scalar_lea.vmem %s3859_s1, %s2951_s27 }
  0x10   : > { %v235_v6 = vld [vmem:[%s219_s30] sm:$0xff]  ;;  %v236_v8 = vld [vmem:[%s219_s30 + $0x8] sm:$0xff]  ;;  %s228_s24 = scalar_lea.vmem %s3860_s2, %s2904_s20  ;;  %s232_s28 = scalar_lea.vmem %s3862_s4, %s2904_s20 }
  0x11   : > { %3044 = vmatprep.mubr.msk.f32.mxu1 %vm238_vm1, %v235_v6  ;;  %v3567_v41 = vld [vmem:[%s3562_s7] sm:$0xff]  ;;  %v3571_v49 = vld [vmem:[%s3562_s7 + $0x8] sm:$0xff] }
  0x12   : > { %3045 = vmatmul.mubr.msk.f32.vlgmr.msra.gmra.mrb[0].mxu1 %vm238_vm1, %v236_v8 }
  0x13   : > { %3207 = vmatpush3.bf16.msra.mxu1 %v3204_v3 }
  0x14   : > { %3209 = vmatprep.subr.bf16.mxu1 %v3208_v7 }
  0x17   : > { %3211 = vmatpush3.bf16.msra.mxu1 %v3208_v7 }
  0xe5   : > { %v3046_v9 = vpop.f32.mrb[0].mxu1 }
  0xe6   : > { %v315_v10 = vpop.f32.mrb[1].mxu1 }
  0xe7   : > { %3055 = vmatprep.mubr.msk.f32.mxu1 %vm328_vm2, %v315_v10  ;;  %v3212_v11 = vpack.c.bf16 %v3046_v9, %v315_v10  ;;  %v3537_v12 = vpack.i.bf16 %v3046_v9, %v315_v10 }
  0xe8   : > { %3056 = vmatmul.mubr.msk.f32.vlgmr.msra.gmra.mrb[2].mxu1 %vm328_vm2, %v3046_v9 }
  0xe9   : > { %3213 = vmatprep.subr.bf16.mxu0 %v3212_v11 }
  0xea   : > { %3215 = vmatpush3.bf16.msra.mxu0 %v3212_v11 }
 0x1bb   : > { %v3057_v13 = vpop.f32.mrb[2].mxu1 }
 0x1bc   : > { %v401_v14 = vpop.f32.mrb[3].mxu1 }
 0x1bd   : > { %410 = vxpose.xlu0.b32.start [1/2] (short) (narrow) %v401_v14, 8 }
 0x1c1   : > { %411 = vxpose.xlu0.b32.end [2/2] (short) (narrow) %v3057_v13, 8 }
 0x23d   : > { %v426_v19 = vpop.trf.xlu0 }
 0x23e   : > { %v456_v20 = vrot.slane %v426_v19, %v3542_v18  ;;  %v445_v21 = vrot.slane %v426_v19, %v3540_v17  ;;  %v467_v23 = vrot.slane %v426_v19, %v3546_v22  ;;  %v478_v25 = vrot.slane %v426_v19, %v3549_v24 }
 0x23f   : > { %v487_v29 = vcombine.high %v426_v19, %v426_v19 }
 0x240   : > { %458 = vbcast.lane.b32.xlu0 %v456_v20, 256  ;;  %447 = vbcast.lane.b32.xlu1 %v445_v21, 256 }
 0x241   : > { %v494_v31 = vrot.slane %v487_v29, %v3552_v30 }
 0x243   : > { %v495_v32 = vcombine.high %v494_v31, %v494_v31  ;;  %v502_v34 = vrot.slane %v494_v31, %v3552_v30 }
 0x244   : > { %451 = vbcast.lane.b32.xlu1 %v445_v21, 264 }
 0x245   : > { %v509_v33 = vrot.slane %v495_v32, %v3552_v30  ;;  %v515_v36 = vrot.slane %v502_v34, %v3540_v17  ;;  %v510_v51 = vcombine.high %v502_v34, %v502_v34 }
 0x247   : > { %v519_v35 = vrot.slane %v509_v33, %v3540_v17  ;;  %v523_v59 = vrot.slane %v510_v51, %v3540_v17  ;;  %v511_v3 = vcombine.high %v509_v33, %v509_v33 }
 0x248   : > { %462 = vbcast.lane.b32.xlu1 %v456_v20, 264 }
 0x249   : > { %v527_v10 = vrot.slane %v511_v3, %v3540_v17 }
 0x24c   : > { %469 = vbcast.lane.b32.xlu1 %v467_v23, 256 }
 0x250   : > { %473 = vbcast.lane.b32.xlu1 %v467_v23, 264 }
 0x254   : > { %480 = vbcast.lane.b32.xlu1 %v478_v25, 256 }
 0x258   : > { %484 = vbcast.lane.b32.xlu1 %v478_v25, 264 }
 0x2b2   : > { %v459_v37 = vpop.permute.xlu0 %458  ;;  %v448_v38 = vpop.permute.xlu1 %447 }
 0x2b3   : > { %v534_v39 = vadd.f32 %v519_v35, %v459_v37  ;;  %v532_v40 = vadd.f32 %v515_v36, %v448_v38 }
 0x2b5   : > { %vm542_vm3 = vcmp.gt.f32.partialorder %v534_v39, 0.0  ;;  %v550_v42 = vmul.f32 0.2, %v534_v39  ;;  %v548_v43 = vmul.f32 0.2, %v532_v40  ;;  %vm540_vm4 = vcmp.gt.f32.partialorder %v532_v40, 0.0 }
 0x2b6   : > { %v452_v44 = vpop.permute.xlu1 %451 }
 0x2b7   : > { %v533_v45 = vadd.f32 %v515_v36, %v452_v44  ;;  %v556_v46 = vsel %vm540_vm4, %v532_v40, %v548_v43  ;;  %v558_v47 = vsel %vm542_vm3, %v534_v39, %v550_v42 }
 0x2b8   : > { %v564_v48 = vadd.f32 %v556_v46, %v3567_v41  ;;  %v566_v54 = vadd.f32 %v558_v47, %v3567_v41 }
 0x2b9   : > { %v549_v50 = vmul.f32 0.2, %v533_v45  ;;  %vm541_vm6 = vcmp.gt.f32.partialorder %v533_v45, 0.0 }
 0x2ba   : > { %v463_v52 = vpop.permute.xlu1 %462  ;;  %v573_v53 = vsel %vm572_vm5, %v564_v48, -inf  ;;  %v579_v61 = vsel %vm572_vm5, %v566_v54, -inf }
 0x2bb   : > { %v535_v55 = vadd.f32 %v519_v35, %v463_v52  ;;  %574 = vmax.xlane.f32.xlu1 %v573_v53  ;;  %v557_v56 = vsel %vm541_vm6, %v533_v45, %v549_v50 }
 0x2bc   : > { %v565_v57 = vadd.f32 %v557_v56, %v3571_v49 }
 0x2bd   : > { %v551_v58 = vmul.f32 0.2, %v535_v55  ;;  %vm543_vm7 = vcmp.gt.f32.partialorder %v535_v55, 0.0 }
 0x2be   : > { %v470_v60 = vpop.permute.xlu1 %469  ;;  %v576_v62 = vsel %vm572_vm5, %v565_v57, -inf }
 0x2bf   : > { %v536_v63 = vadd.f32 %v523_v59, %v470_v60  ;;  %580 = vmax.xlane.f32.xlu1 %v579_v61  ;;  %577 = vmax.xlane.f32.xlu0 %v576_v62  ;;  %v559_v0 = vsel %vm543_vm7, %v535_v55, %v551_v58 }
 0x2c0   : > { %v567_v1 = vadd.f32 %v559_v0, %v3571_v49 }
 0x2c1   : > { %v552_v2 = vmul.f32 0.2, %v536_v63  ;;  %vm544_vm8 = vcmp.gt.f32.partialorder %v536_v63, 0.0 }
 0x2c2   : > { %v474_v4 = vpop.permute.xlu1 %473  ;;  %v582_v5 = vsel %vm572_vm5, %v567_v1, -inf }
 0x2c3   : > { %v537_v6 = vadd.f32 %v523_v59, %v474_v4  ;;  %583 = vmax.xlane.f32.xlu1 %v582_v5  ;;  %v560_v7 = vsel %vm544_vm8, %v536_v63, %v552_v2 }
 0x2c4   : > { %v568_v8 = vadd.f32 %v560_v7, %v3567_v41 }
 0x2c5   : > { %v553_v9 = vmul.f32 0.2, %v537_v6  ;;  %vm545_vm9 = vcmp.gt.f32.partialorder %v537_v6, 0.0 }
 0x2c6   : > { %v481_v11 = vpop.permute.xlu1 %480  ;;  %v585_v13 = vsel %vm572_vm5, %v568_v8, -inf }
 0x2c7   : > { %v538_v14 = vadd.f32 %v527_v10, %v481_v11  ;;  %586 = vmax.xlane.f32.xlu1 %v585_v13  ;;  %v561_v15 = vsel %vm545_vm9, %v537_v6, %v553_v9 }
 0x2c8   : > { %v569_v16 = vadd.f32 %v561_v15, %v3571_v49 }
 0x2c9   : > { %v554_v19 = vmul.f32 0.2, %v538_v14  ;;  %vm546_vm10 = vcmp.gt.f32.partialorder %v538_v14, 0.0 }
 0x2ca   : > { %v485_v20 = vpop.permute.xlu1 %484  ;;  %v588_v21 = vsel %vm572_vm5, %v569_v16, -inf }
 0x2cb   : > { %v539_v23 = vadd.f32 %v527_v10, %v485_v20  ;;  %589 = vmax.xlane.f32.xlu1 %v588_v21  ;;  %v562_v25 = vsel %vm546_vm10, %v538_v14, %v554_v19 }
 0x2cc   : > { %v570_v26 = vadd.f32 %v562_v25, %v3567_v41 }
 0x2cd   : > { %v555_v27 = vmul.f32 0.2, %v539_v23  ;;  %vm547_vm11 = vcmp.gt.f32.partialorder %v539_v23, 0.0 }
 0x2ce   : > { %v591_v28 = vsel %vm572_vm5, %v570_v26, -inf }
 0x2cf   : > { %592 = vmax.xlane.f32.xlu0 %v591_v28  ;;  %v563_v29 = vsel %vm547_vm11, %v539_v23, %v555_v27 }
 0x2d0   : > { %v571_v31 = vadd.f32 %v563_v29, %v3571_v49 }
 0x2d2   : > { %v594_v32 = vsel %vm572_vm5, %v571_v31, -inf }
 0x2d3   : > { %595 = vmax.xlane.f32.xlu1 %v594_v32 }
 0x348   : > { %v575_v33 = vpop.xlane.xlu1 %574 }
 0x349   : > { %v597_v34 = vsub.f32 %v564_v48, %v575_v33 }
 0x34b   : > { %v605_v35 = vmul.f32 1.442695, %v597_v34 }
 0x34c   : > { %v578_v36 = vpop.xlane.xlu0 %577  ;;  %v581_v37 = vpop.xlane.xlu1 %580 }
 0x34d   : > { %3364 = vpow2.f32 %v605_v35  ;;  %v598_v38 = vsub.f32 %v565_v57, %v578_v36  ;;  %v599_v39 = vsub.f32 %v566_v54, %v581_v37 }
 0x34f   : > { %v607_v40 = vmul.f32 1.442695, %v598_v38  ;;  %v609_v42 = vmul.f32 1.442695, %v599_v39 }
 0x350   : > { %v584_v43 = vpop.xlane.xlu1 %583 }
 0x351   : > { %3366 = vpow2.f32 %v607_v40  ;;  %v600_v44 = vsub.f32 %v567_v1, %v584_v43 }
 0x352   : > { %3368 = vpow2.f32 %v609_v42 }
 0x353   : > { %v611_v45 = vmul.f32 1.442695, %v600_v44 }
 0x354   : > { %v587_v46 = vpop.xlane.xlu1 %586 }
 0x355   : > { %3370 = vpow2.f32 %v611_v45  ;;  %v601_v47 = vsub.f32 %v568_v8, %v587_v46 }
 0x357   : > { %v3365_v50 = vpop.eup %3364  ;;  %v613_v51 = vmul.f32 1.442695, %v601_v47 }
 0x358   : > { %v590_v52 = vpop.xlane.xlu1 %589  ;;  %v621_v48 = vsel %vm572_vm5, %v3365_v50, 0.0 }
 0x359   : > { %3372 = vpow2.f32 %v613_v51  ;;  %v602_v53 = vsub.f32 %v569_v16, %v590_v52  ;;  %622 = vadd.xlane.f32.xlu0 %v621_v48 }
 0x35b   : > { %v3367_v55 = vpop.eup %3366  ;;  %v615_v54 = vmul.f32 1.442695, %v602_v53 }
 0x35c   : > { %v3369_v56 = vpop.eup %3368  ;;  %v593_v57 = vpop.xlane.xlu0 %592  ;;  %v624_v58 = vsel %vm572_vm5, %v3367_v55, 0.0 }
 0x35d   : > { %3374 = vpow2.f32 %v615_v54  ;;  %v603_v59 = vsub.f32 %v570_v26, %v593_v57  ;;  %625 = vadd.xlane.f32.xlu1 %v624_v58  ;;  %v627_v60 = vsel %vm572_vm5, %v3369_v56, 0.0 }
 0x35e   : > { %628 = vadd.xlane.f32.xlu0 %v627_v60  ;;  %v1050_v60 = vld [vmem:[%s3861_s3 + $0x4] sm:$0xff] }
 0x35f   : > { %v3593_v61 = vpop.eup %3370  ;;  %v617_v62 = vmul.f32 1.442695, %v603_v59 }
 0x360   : > { %v630_v63 = vsel %vm572_vm5, %v3593_v61, 0.0  ;;  %v596_v6 = vpop.xlane.xlu1 %595 }
 0x361   : > { %3376 = vpow2.f32 %v617_v62  ;;  %631 = vadd.xlane.f32.xlu1 %v630_v63  ;;  %v604_v7 = vsub.f32 %v571_v31, %v596_v6  ;;  %v1052_v62 = vld [vmem:[%s3861_s3 + $0x14] sm:$0xff] }
 0x362   : > { %v1137_v6 = vld [vmem:[%s3861_s3 + $0x74] sm:$0xff] }
 0x363   : > { %v3373_v0 = vpop.eup %3372  ;;  %v619_v8 = vmul.f32 1.442695, %v604_v7 }
 0x364   : > { %v633_v1 = vsel %vm572_vm5, %v3373_v0, 0.0 }
 0x365   : > { %634 = vadd.xlane.f32.xlu0 %v633_v1  ;;  %3378 = vpow2.f32 %v619_v8  ;;  %v1138_v8 = vld [vmem:[%s3861_s3 + $0x7c] sm:$0xff] }
 0x367   : > { %v3375_v2 = vpop.eup %3374 }
 0x368   : > { %v636_v3 = vsel %vm572_vm5, %v3375_v2, 0.0 }
 0x369   : > { %637 = vadd.xlane.f32.xlu1 %v636_v3 }
 0x36b   : > { %v3377_v4 = vpop.eup %3376 }
 0x36c   : > { %v639_v5 = vsel %vm572_vm5, %v3377_v4, 0.0 }
 0x36d   : > { %640 = vadd.xlane.f32.xlu0 %v639_v5  ;;  %v1136_v5 = vld [vmem:[%s3861_s3 + $0x6c] sm:$0xff] }
 0x36f   : > { %v3379_v9 = vpop.eup %3378 }
 0x370   : > { %v642_v10 = vsel %vm572_vm5, %v3379_v9, 0.0 }
 0x37a   : > { %3325 = vrot.lane.b32.xlu1 %v3537_v12, %s3471_s8 }
 0x383   : > { %3320 = vrot.lane.b32.xlu0 %v3537_v12, %s3472_s9 }
 0x39e   : > { %643 = vadd.xlane.f32.xlu1 %v642_v10 }
 0x3af   : > { %3330 = vrot.lane.b32.xlu1 %v3537_v12, %s3473_s10 }
 0x3e6   : > { %v623_v11 = vpop.xlane.xlu0 %622 }
 0x3e7   : > { %3380 = vrcp.f32 %v623_v11 }
 0x3ea   : > { %v626_v13 = vpop.xlane.xlu1 %625 }
 0x3eb   : > { %v629_v14 = vpop.xlane.xlu0 %628  ;;  %3382 = vrcp.f32 %v626_v13 }
 0x3ec   : > { %3384 = vrcp.f32 %v629_v14 }
 0x3ee   : > { %v632_v16 = vpop.xlane.xlu1 %631 }
 0x3f1   : > { %v3381_v15 = vpop.eup %3380 }
 0x3f2   : > { %v635_v19 = vpop.xlane.xlu0 %634  ;;  %v646_v20 = vmul.f32 %v3381_v15, %v3365_v50 }
 0x3f3   : > { %3386 = vrcp.f32 %v635_v19  ;;  %v2919_v19 = vld [vmem:[%s3861_s3 + $0xc4] ss:$0 sm:$0xff] }
 0x3f4   : > { %3062 = vmatprep.mubr.msk.f32.mxu0 %vm572_vm5, %v646_v20 }
 0x3f5   : > { %v3383_v21 = vpop.eup %3382 }
 0x3f6   : > { %v3385_v23 = vpop.eup %3384  ;;  %v638_v25 = vpop.xlane.xlu1 %637  ;;  %v648_v26 = vmul.f32 %v3383_v21, %v3367_v55 }
 0x3f7   : > { %3388 = vrcp.f32 %v638_v25  ;;  %v650_v27 = vmul.f32 %v3385_v23, %v3369_v56 }
 0x3f8   : > { %3390 = vrcp.f32 %v632_v16  ;;  %3063 = vmatmul.mubr.msk.f32.vlgmr.msra.gmra.mrb[0].mxu0 %vm572_vm5, %v648_v26 }
 0x3f9   : > { %3069 = vmatprep.mubr.msk.f32.mxu0 %vm572_vm5, %v650_v27 }
 0x3fa   : > { %v641_v12 = vpop.xlane.xlu0 %640  ;;  %v3326_v28 = vpop.permute.xlu1 %3325 }
 0x3fb   : > { %3392 = vrcp.f32 %v641_v12  ;;  %v3328_v29 = vunpack.i.h.bf16 %v3326_v28  ;;  %v3327_v31 = vunpack.i.l.bf16 %v3326_v28 }
 0x3fd   : > { %v3387_v32 = vpop.eup %3386  ;;  %v3220_v33 = vpack.c.bf16 %v3328_v29, %v3327_v31 }
 0x3fe   : > { %v3321_v34 = vpop.permute.xlu0 %3320  ;;  %v654_v35 = vmul.f32 %v3387_v32, %v3373_v0  ;;  %v1053_v0 = vld [vmem:[%s3861_s3 + $0x1c] sm:$0xff] }
 0x3ff   : > { %v3323_v36 = vunpack.i.h.bf16 %v3321_v34  ;;  %v3322_v37 = vunpack.i.l.bf16 %v3321_v34  ;;  %3221 = vmatprep.subr.bf16.mxu1 %v3220_v33  ;;  %v3232_v1 = vpack.c.bf16 %v1053_v0, %v1052_v62 }
 0x400   : > { %3223 = vmatpush3.bf16.msra.mxu1 %v3220_v33  ;;  %3076 = vmatprep.mubr.msk.f32.mxu1 %vm572_vm5, %v654_v35 }
 0x401   : > { %v3389_v38 = vpop.eup %3388  ;;  %v3216_v39 = vpack.c.bf16 %v3323_v36, %v3322_v37 }
 0x402   : > { %v3391_v40 = vpop.eup %3390  ;;  %v656_v42 = vmul.f32 %v3389_v38, %v3375_v2 }
 0x403   : > { %3217 = vmatprep.subr.bf16.mxu0 %v3216_v39  ;;  %v652_v44 = vmul.f32 %v3391_v40, %v3593_v61  ;;  %v1051_v61 = vld [vmem:[%s3861_s3 + $0xc] sm:$0xff] }
 0x404   : > { %3219 = vmatpush3.bf16.msra.mxu0 %v3216_v39  ;;  %3077 = vmatmul.mubr.msk.f32.vlgmr.msra.gmra.mrb[4].mxu1 %vm572_vm5, %v656_v42  ;;  %v3228_v63 = vpack.c.bf16 %v1051_v61, %v1050_v60 }
 0x405   : > { %v3393_v43 = vpop.eup %3392 }
 0x406   : > { %v658_v45 = vmul.f32 %v3393_v43, %v3377_v4  ;;  %3229 = vmatprep.subr.bf16.mxu1 %v3228_v63  ;;  %v1135_v4 = vld [vmem:[%s3861_s3 + $0x64] sm:$0xff] }
 0x407   : > { %3070 = vmatmul.mubr.msk.f32.vlgmr.msra.gmra.mrb[2].mxu0 %vm572_vm5, %v652_v44  ;;  %3231 = vmatpush3.bf16.msra.mxu1 %v3228_v63  ;;  %v3236_v7 = vpack.c.bf16 %v1136_v5, %v1135_v4 }
 0x408   : > { %3083 = vmatprep.mubr.msk.f32.mxu0 %vm572_vm5, %v658_v45  ;;  %3233 = vmatprep.subr.bf16.mxu1 %v3232_v1 }
 0x40b   : > { %3235 = vmatpush3.bf16.msra.mxu1 %v3232_v1 }
 0x42b   : > { %v644_v46 = vpop.xlane.xlu1 %643 }
 0x42c   : > { %3394 = vrcp.f32 %v644_v46 }
 0x42f   : > { %v3331_v47 = vpop.permute.xlu1 %3330 }
 0x430   : > { %v3333_v50 = vunpack.i.h.bf16 %v3331_v47  ;;  %v3332_v51 = vunpack.i.l.bf16 %v3331_v47 }
 0x432   : > { %v3224_v52 = vpack.c.bf16 %v3333_v50, %v3332_v51 }
 0x434   : > { %3225 = vmatprep.subr.bf16.mxu0 %v3224_v52 }
 0x435   : > { %3227 = vmatpush3.bf16.msra.mxu0 %v3224_v52 }
 0x436   : > { %v3395_v48 = vpop.eup %3394  ;;  %3237 = vmatprep.subr.bf16.mxu0 %v3236_v7 }
 0x437   : > { %v660_v53 = vmul.f32 %v3395_v48, %v3379_v9  ;;  %v3240_v9 = vpack.c.bf16 %v1138_v8, %v1137_v6 }
 0x439   : > { %3084 = vmatmul.mubr.msk.f32.vlgmr.msra.gmra.mrb[4].mxu0 %vm572_vm5, %v660_v53 }
 0x43a   : > { %3239 = vmatpush3.bf16.msra.mxu0 %v3236_v7 }
 0x43b   : > { %3241 = vmatprep.subr.bf16.mxu0 %v3240_v9 }
 0x43e   : > { %3243 = vmatpush3.bf16.msra.mxu0 %v3240_v9 }
 0x4cb   : > { %v3064_v55 = vpop.f32.mrb[0].mxu0 }
 0x4cc   : > { %744 = vst.msk [vmem:[#allocation2 + $0x8] sm:$0xff] %vm742_vm12, %v3064_v55  ;;  %v733_v54 = vpop.f32.mrb[1].mxu0 }
 0x4cd   : > { %743 = vst.msk [vmem:[#allocation2] sm:$0xff] %vm742_vm12, %v733_v54 }
 0x4d7   : > { %v3078_v56 = vpop.f32.mrb[4].mxu1 }
 0x4d8   : > { %934 = vrot.lane.b32.xlu0 %v3078_v56, %s3474_s11  ;;  %v921_v57 = vpop.f32.mrb[5].mxu1 }
 0x4d9   : > { %932 = vrot.lane.b32.xlu1 %v921_v57, %s3474_s11 }
 0x4da   : > { %v3071_v58 = vpop.f32.mrb[2].mxu0 }
 0x4db   : > { %v823_v59 = vpop.f32.mrb[3].mxu0 }
 0x4dc   : > { %836 = vrot.lane.b32.xlu0 %v3071_v58, %s3475_s12 }
 0x4dd   : > { %834 = vrot.lane.b32.xlu1 %v823_v59, %s3475_s12 }
 0x50c   : > { %v3085_v2 = vpop.f32.mrb[4].mxu0 }
 0x50d   : > { %v1019_v3 = vpop.f32.mrb[5].mxu0  ;;  %1032 = vrot.lane.b32.xlu0 %v3085_v2, %s3476_s23 }
 0x50e   : > { %1030 = vrot.lane.b32.xlu1 %v1019_v3, %s3476_s23 }
 0x54a   : > { %v935_v10 = vpop.permute.xlu0 %934 }
 0x54b   : > { %v933_v11 = vpop.permute.xlu1 %932 }
 0x54e   : > { %v837_v13 = vpop.permute.xlu0 %836 }
 0x54f   : > { %842 = vst.msk [vmem:[#allocation2 + $0x8] sm:$0xff] %vm840_vm13, %v837_v13  ;;  %v835_v14 = vpop.permute.xlu1 %834 }
 0x550   : > { %841 = vst.msk [vmem:[#allocation2] sm:$0xff] %vm840_vm13, %v835_v14 }
 0x551   : > { %940 = vst.msk [vmem:[#allocation2 + $0x8] sm:$0xff] %vm938_vm14, %v935_v10  ;;  %939 = vst.msk [vmem:[#allocation2] sm:$0xff] %vm938_vm14, %v933_v11 }
 0x57f   : > { %v1033_v15 = vpop.permute.xlu0 %1032 }
 0x580   : > { %1038 = vst.msk [vmem:[#allocation2 + $0x8] sm:$0xff] %vm1036_vm15, %v1033_v15  ;;  %v1031_v16 = vpop.permute.xlu1 %1030 }
 0x581   : > { %1037 = vst.msk [vmem:[#allocation2] sm:$0xff] %vm1036_vm15, %v1031_v16 }
 0x587   : > { %v1041_v20 = vld [vmem:[#allocation2 + $0x8] sm:$0xff] }
 0x588   : > { %v1040_v21 = vld [vmem:[#allocation2] sm:$0xff]  ;;  %v1047_v23 = vadd.f32 %v2919_v19, %v1041_v20 }
 0x589   : > { %v1046_v25 = vadd.f32 %v2919_v19, %v1040_v21 }
 0x58a   : > { %v1049_v27 = vmax.f32 %v1047_v23, 0.0 }
 0x58b   : > { %v1048_v26 = vmax.f32 %v1046_v25, 0.0 }
 0x58d   : > { %3094 = vmatprep.mubr.msk.f32.mxu1 %vm328_vm2, %v1048_v26 }
 0x58e   : > { %3095 = vmatmul.mubr.msk.f32.vlgmr.msra.gmra.mrb[6].mxu1 %vm328_vm2, %v1049_v27 }
 0x661   : > { %v3096_v12 = vpop.f32.mrb[6].mxu1 }
 0x662   : > { %v1126_v28 = vpop.f32.mrb[7].mxu1 }
 0x663   : > { %3105 = vmatprep.mubr.msk.f32.mxu0 %vm328_vm2, %v1126_v28  ;;  %v3244_v29 = vpack.c.bf16 %v3096_v12, %v1126_v28  ;;  %v3660_v31 = vpack.i.bf16 %v3096_v12, %v1126_v28 }
 0x664   : > { %3106 = vmatmul.mubr.msk.f32.vlgmr.msra.gmra.mrb[6].mxu0 %vm328_vm2, %v3096_v12 }
 0x665   : > { %3245 = vmatprep.subr.bf16.mxu1 %v3244_v29 }
 0x666   : > { %3247 = vmatpush3.bf16.msra.mxu1 %v3244_v29 }
 0x737   : > { %v3107_v32 = vpop.f32.mrb[6].mxu0 }
 0x738   : > { %v1211_v33 = vpop.f32.mrb[7].mxu0 }
 0x739   : > { %1220 = vxpose.xlu1.b32.start [1/2] (short) (narrow) %v1211_v33, 8 }
 0x73d   : > { %1221 = vxpose.xlu1.b32.end [2/2] (short) (narrow) %v3107_v32, 8 }
 0x7b9   : > { %v1236_v34 = vpop.trf.xlu1 }
 0x7ba   : > { %v1255_v35 = vrot.slane %v1236_v34, %v3540_v17  ;;  %v1266_v36 = vrot.slane %v1236_v34, %v3542_v18  ;;  %v1277_v37 = vrot.slane %v1236_v34, %v3546_v22  ;;  %v1288_v38 = vrot.slane %v1236_v34, %v3549_v24 }
 0x7bb   : > { %v1297_v39 = vcombine.high %v1236_v34, %v1236_v34 }
 0x7bc   : > { %1257 = vbcast.lane.b32.xlu0 %v1255_v35, 256 }
 0x7bd   : > { %v1304_v40 = vrot.slane %v1297_v39, %v3552_v30 }
 0x7bf   : > { %v1312_v42 = vrot.slane %v1304_v40, %v3552_v30  ;;  %v1305_v44 = vcombine.high %v1304_v40, %v1304_v40 }
 0x7c0   : > { %1261 = vbcast.lane.b32.xlu0 %v1255_v35, 264 }
 0x7c1   : > { %v1325_v43 = vrot.slane %v1312_v42, %v3540_v17  ;;  %v1319_v50 = vrot.slane %v1305_v44, %v3552_v30  ;;  %v1320_v62 = vcombine.high %v1312_v42, %v1312_v42 }
 0x7c3   : > { %v1329_v54 = vrot.slane %v1319_v50, %v3540_v17  ;;  %v1333_v5 = vrot.slane %v1320_v62, %v3540_v17  ;;  %v1321_v13 = vcombine.high %v1319_v50, %v1319_v50 }
 0x7c4   : > { %1268 = vbcast.lane.b32.xlu0 %v1266_v36, 256 }
 0x7c5   : > { %v1337_v23 = vrot.slane %v1321_v13, %v3540_v17 }
 0x7c8   : > { %1272 = vbcast.lane.b32.xlu0 %v1266_v36, 264 }
 0x7cc   : > { %1279 = vbcast.lane.b32.xlu0 %v1277_v37, 256 }
 0x7d0   : > { %1283 = vbcast.lane.b32.xlu0 %v1277_v37, 264 }
 0x7d4   : > { %1290 = vbcast.lane.b32.xlu0 %v1288_v38, 256 }
 0x7d8   : > { %1294 = vbcast.lane.b32.xlu0 %v1288_v38, 264 }
 0x82e   : > { %v1258_v45 = vpop.permute.xlu0 %1257 }
 0x82f   : > { %v1342_v46 = vadd.f32 %v1325_v43, %v1258_v45 }
 0x831   : > { %vm1350_vm0 = vcmp.gt.f32.partialorder %v1342_v46, 0.0  ;;  %v1358_v47 = vmul.f32 0.2, %v1342_v46 }
 0x832   : > { %v1262_v51 = vpop.permute.xlu0 %1261 }
 0x833   : > { %v1343_v52 = vadd.f32 %v1325_v43, %v1262_v51  ;;  %v1366_v48 = vsel %vm1350_vm0, %v1342_v46, %v1358_v47 }
 0x834   : > { %v3672_v53 = vadd.f32 %v1366_v48, %v3567_v41 }
 0x835   : > { %vm1351_vm1 = vcmp.gt.f32.partialorder %v1343_v52, 0.0  ;;  %v1359_v55 = vmul.f32 0.2, %v1343_v52 }
 0x836   : > { %v1269_v56 = vpop.permute.xlu0 %1268  ;;  %v1382_v57 = vsel %vm572_vm5, %v3672_v53, -inf }
 0x837   : > { %v1344_v58 = vadd.f32 %v1329_v54, %v1269_v56  ;;  %1383 = vmax.xlane.f32.xlu0 %v1382_v57  ;;  %v1367_v59 = vsel %vm1351_vm1, %v1343_v52, %v1359_v55 }
 0x838   : > { %v1375_v60 = vadd.f32 %v1367_v59, %v3571_v49 }
 0x839   : > { %vm1352_vm3 = vcmp.gt.f32.partialorder %v1344_v58, 0.0  ;;  %v1360_v61 = vmul.f32 0.2, %v1344_v58 }
 0x83a   : > { %v1273_v63 = vpop.permute.xlu0 %1272  ;;  %v1385_v0 = vsel %vm572_vm5, %v1375_v60, -inf }
 0x83b   : > { %v1345_v1 = vadd.f32 %v1329_v54, %v1273_v63  ;;  %1386 = vmax.xlane.f32.xlu1 %v1385_v0  ;;  %v1368_v2 = vsel %vm1352_vm3, %v1344_v58, %v1360_v61 }
 0x83c   : > { %v1376_v3 = vadd.f32 %v1368_v2, %v3567_v41 }
 0x83d   : > { %vm1353_vm4 = vcmp.gt.f32.partialorder %v1345_v1, 0.0  ;;  %v1361_v4 = vmul.f32 0.2, %v1345_v1 }
 0x83e   : > { %v1280_v6 = vpop.permute.xlu0 %1279  ;;  %v1388_v7 = vsel %vm572_vm5, %v1376_v3, -inf }
 0x83f   : > { %v1346_v8 = vadd.f32 %v1333_v5, %v1280_v6  ;;  %1389 = vmax.xlane.f32.xlu0 %v1388_v7  ;;  %v1369_v9 = vsel %vm1353_vm4, %v1345_v1, %v1361_v4 }
 0x840   : > { %v1377_v10 = vadd.f32 %v1369_v9, %v3571_v49 }
 0x841   : > { %vm1354_vm6 = vcmp.gt.f32.partialorder %v1346_v8, 0.0  ;;  %v1362_v11 = vmul.f32 0.2, %v1346_v8 }
 0x842   : > { %v1284_v14 = vpop.permute.xlu0 %1283  ;;  %v1391_v15 = vsel %vm572_vm5, %v1377_v10, -inf }
 0x843   : > { %v1347_v16 = vadd.f32 %v1333_v5, %v1284_v14  ;;  %1392 = vmax.xlane.f32.xlu0 %v1391_v15  ;;  %v1370_v19 = vsel %vm1354_vm6, %v1346_v8, %v1362_v11 }
 0x844   : > { %v1378_v20 = vadd.f32 %v1370_v19, %v3567_v41 }
 0x845   : > { %vm1355_vm7 = vcmp.gt.f32.partialorder %v1347_v16, 0.0  ;;  %v1363_v21 = vmul.f32 0.2, %v1347_v16 }
 0x846   : > { %v1291_v25 = vpop.permute.xlu0 %1290  ;;  %v1394_v26 = vsel %vm572_vm5, %v1378_v20, -inf }
 0x847   : > { %v1348_v27 = vadd.f32 %v1337_v23, %v1291_v25  ;;  %1395 = vmax.xlane.f32.xlu0 %v1394_v26  ;;  %v1371_v12 = vsel %vm1355_vm7, %v1347_v16, %v1363_v21 }
 0x848   : > { %v1379_v28 = vadd.f32 %v1371_v12, %v3571_v49 }
 0x849   : > { %vm1356_vm8 = vcmp.gt.f32.partialorder %v1348_v27, 0.0  ;;  %v1364_v29 = vmul.f32 0.2, %v1348_v27 }
 0x84a   : > { %v1295_v32 = vpop.permute.xlu0 %1294  ;;  %v1397_v33 = vsel %vm572_vm5, %v1379_v28, -inf }
 0x84b   : > { %v1349_v34 = vadd.f32 %v1337_v23, %v1295_v32  ;;  %1398 = vmax.xlane.f32.xlu0 %v1397_v33  ;;  %v1372_v35 = vsel %vm1356_vm8, %v1348_v27, %v1364_v29 }
 0x84c   : > { %3335 = vrot.lane.b32.xlu1 %v3660_v31, %s3472_s9  ;;  %v1380_v36 = vadd.f32 %v1372_v35, %v3567_v41 }
 0x84d   : > { %vm1357_vm9 = vcmp.gt.f32.partialorder %v1349_v34, 0.0  ;;  %v1365_v37 = vmul.f32 0.2, %v1349_v34 }
 0x84e   : > { %v1400_v38 = vsel %vm572_vm5, %v1380_v36, -inf }
 0x84f   : > { %1401 = vmax.xlane.f32.xlu0 %v1400_v38  ;;  %v1373_v39 = vsel %vm1357_vm9, %v1349_v34, %v1365_v37 }
 0x850   : > { %v1381_v40 = vadd.f32 %v1373_v39, %v3571_v49 }
 0x852   : > { %v1403_v42 = vsel %vm572_vm5, %v1381_v40, -inf }
 0x853   : > { %1404 = vmax.xlane.f32.xlu0 %v1403_v42 }
 0x8c4   : > { %v1384_v43 = vpop.xlane.xlu0 %1383 }
 0x8c5   : > { %v1406_v44 = vsub.f32 %v3672_v53, %v1384_v43 }
 0x8c7   : > { %v1414_v45 = vmul.f32 1.442695, %v1406_v44 }
 0x8c8   : > { %v1387_v46 = vpop.xlane.xlu1 %1386 }
 0x8c9   : > { %3396 = vpow2.f32 %v1414_v45  ;;  %v1407_v47 = vsub.f32 %v1375_v60, %v1387_v46 }
 0x8cb   : > { %v1416_v50 = vmul.f32 1.442695, %v1407_v47 }
 0x8cc   : > { %v3336_v41 = vpop.permute.xlu1 %3335  ;;  %v1390_v51 = vpop.xlane.xlu0 %1389 }
 0x8cd   : > { %3398 = vpow2.f32 %v1416_v50  ;;  %v3338_v52 = vunpack.i.h.bf16 %v3336_v41  ;;  %v3337_v48 = vunpack.i.l.bf16 %v3336_v41  ;;  %v1408_v55 = vsub.f32 %v1376_v3, %v1390_v51 }
 0x8cf   : > { %v3248_v54 = vpack.c.bf16 %v3338_v52, %v3337_v48  ;;  %v1418_v56 = vmul.f32 1.442695, %v1408_v55 }
 0x8d0   : > { %v1393_v49 = vpop.xlane.xlu0 %1392 }
 0x8d1   : > { %3400 = vpow2.f32 %v1418_v56  ;;  %v1409_v57 = vsub.f32 %v1377_v10, %v1393_v49  ;;  %3249 = vmatprep.subr.bf16.mxu0 %v3248_v54 }
 0x8d2   : > { %3251 = vmatpush3.bf16.msra.mxu0 %v3248_v54 }
 0x8d3   : > { %v3397_v58 = vpop.eup %3396  ;;  %v1420_v53 = vmul.f32 1.442695, %v1409_v57 }
 0x8d4   : > { %v1396_v59 = vpop.xlane.xlu0 %1395  ;;  %v1430_v61 = vsel %vm572_vm5, %v3397_v58, 0.0 }
 0x8d5   : > { %3402 = vpow2.f32 %v1420_v53  ;;  %v1410_v60 = vsub.f32 %v1378_v20, %v1396_v59  ;;  %1431 = vadd.xlane.f32.xlu1 %v1430_v61 }
 0x8d7   : > { %v3399_v62 = vpop.eup %3398  ;;  %v1422_v63 = vmul.f32 1.442695, %v1410_v60 }
 0x8d8   : > { %v1399_v0 = vpop.xlane.xlu0 %1398  ;;  %v1433_v1 = vsel %vm572_vm5, %v3399_v62, 0.0 }
 0x8d9   : > { %3404 = vpow2.f32 %v1422_v63  ;;  %v1411_v2 = vsub.f32 %v1379_v28, %v1399_v0  ;;  %1434 = vadd.xlane.f32.xlu0 %v1433_v1  ;;  %v1855_v63 = vld [vmem:[%s3861_s3 + $0x24] sm:$0xff]  ;;  %v1856_v0 = vld [vmem:[%s3861_s3 + $0x2c] sm:$0xff]  ;;  %v1857_v1 = vld [vmem:[%s3861_s3 + $0x34] sm:$0xff] }
 0x8db   : > { %v3401_v3 = vpop.eup %3400  ;;  %v1424_v4 = vmul.f32 1.442695, %v1411_v2  ;;  %v3260_v2 = vpack.c.bf16 %v1856_v0, %v1855_v63 }
 0x8dc   : > { %v1402_v5 = vpop.xlane.xlu0 %1401  ;;  %v1436_v6 = vsel %vm572_vm5, %v3401_v3, 0.0 }
 0x8dd   : > { %3406 = vpow2.f32 %v1424_v4  ;;  %v1412_v7 = vsub.f32 %v1380_v36, %v1402_v5  ;;  %1437 = vadd.xlane.f32.xlu1 %v1436_v6 }
 0x8df   : > { %v3403_v8 = vpop.eup %3402  ;;  %v1426_v9 = vmul.f32 1.442695, %v1412_v7 }
 0x8e0   : > { %v1405_v10 = vpop.xlane.xlu0 %1404  ;;  %v1439_v11 = vsel %vm572_vm5, %v3403_v8, 0.0 }
 0x8e1   : > { %3408 = vpow2.f32 %v1426_v9  ;;  %v1413_v13 = vsub.f32 %v1381_v40, %v1405_v10  ;;  %1440 = vadd.xlane.f32.xlu0 %v1439_v11  ;;  %v1940_v9 = vld [vmem:[%s3861_s3 + $0x84] sm:$0xff]  ;;  %v1941_v10 = vld [vmem:[%s3861_s3 + $0x8c] sm:$0xff]  ;;  %v1942_v11 = vld [vmem:[%s3861_s3 + $0x94] sm:$0xff] }
 0x8e3   : > { %v3405_v14 = vpop.eup %3404  ;;  %v1428_v15 = vmul.f32 1.442695, %v1413_v13  ;;  %v3268_v13 = vpack.c.bf16 %v1941_v10, %v1940_v9 }
 0x8e4   : > { %v1442_v16 = vsel %vm572_vm5, %v3405_v14, 0.0 }
 0x8e5   : > { %3410 = vpow2.f32 %v1428_v15  ;;  %1443 = vadd.xlane.f32.xlu1 %v1442_v16 }
 0x8e7   : > { %v3407_v19 = vpop.eup %3406 }
 0x8e8   : > { %v1445_v20 = vsel %vm572_vm5, %v3407_v19, 0.0 }
 0x8e9   : > { %1446 = vadd.xlane.f32.xlu0 %v1445_v20 }
 0x8eb   : > { %v3409_v21 = vpop.eup %3408 }
 0x8ec   : > { %v1448_v23 = vsel %vm572_vm5, %v3409_v21, 0.0 }
 0x8ed   : > { %1449 = vadd.xlane.f32.xlu1 %v1448_v23 }
 0x8ef   : > { %v3411_v25 = vpop.eup %3410 }
 0x8f0   : > { %v1451_v26 = vsel %vm572_vm5, %v3411_v25, 0.0 }
 0x8f1   : > { %1452 = vadd.xlane.f32.xlu0 %v1451_v26  ;;  %v2932_v26 = vld [vmem:[%s3861_s3 + $0xc5] ss:$0 sm:$0xff] }
 0x8fe   : > { %3345 = vrot.lane.b32.xlu1 %v3660_v31, %s3473_s10 }
 0x907   : > { %3340 = vrot.lane.b32.xlu0 %v3660_v31, %s3471_s8 }
 0x962   : > { %v1432_v27 = vpop.xlane.xlu1 %1431 }
 0x963   : > { %3412 = vrcp.f32 %v1432_v27 }
 0x966   : > { %v1435_v12 = vpop.xlane.xlu0 %1434 }
 0x967   : > { %3414 = vrcp.f32 %v1435_v12 }
 0x96a   : > { %v1438_v28 = vpop.xlane.xlu1 %1437 }
 0x96b   : > { %3416 = vrcp.f32 %v1438_v28 }
 0x96d   : > { %v3413_v29 = vpop.eup %3412 }
 0x96e   : > { %v1441_v32 = vpop.xlane.xlu0 %1440  ;;  %v1455_v33 = vmul.f32 %v3413_v29, %v3397_v58 }
 0x96f   : > { %3418 = vrcp.f32 %v1441_v32 }
 0x970   : > { %3112 = vmatprep.mubr.msk.f32.mxu1 %vm572_vm5, %v1455_v33 }
 0x971   : > { %v3415_v34 = vpop.eup %3414 }
 0x972   : > { %v1457_v35 = vmul.f32 %v3415_v34, %v3399_v62  ;;  %v1444_v36 = vpop.xlane.xlu1 %1443 }
 0x973   : > { %3420 = vrcp.f32 %v1444_v36 }
 0x974   : > { %3113 = vmatmul.mubr.msk.f32.vlgmr.msra.gmra.mrb[8].mxu1 %vm572_vm5, %v1457_v35 }
 0x975   : > { %v3417_v37 = vpop.eup %3416 }
 0x976   : > { %v1459_v31 = vmul.f32 %v3417_v37, %v3401_v3  ;;  %v1447_v39 = vpop.xlane.xlu0 %1446  ;;  %v1858_v3 = vld [vmem:[%s3861_s3 + $0x3c] sm:$0xff] }
 0x977   : > { %v3264_v4 = vpack.c.bf16 %v1858_v3, %v1857_v1 }
 0x978   : > { %3119 = vmatprep.mubr.msk.f32.mxu0 %vm572_vm5, %v1459_v31 }
 0x979   : > { %v3419_v38 = vpop.eup %3418 }
 0x97a   : > { %v1461_v40 = vmul.f32 %v3419_v38, %v3403_v8  ;;  %v1450_v42 = vpop.xlane.xlu1 %1449 }
 0x97b   : > { %3422 = vrcp.f32 %v1450_v42 }
 0x97c   : > { %3424 = vrcp.f32 %v1447_v39  ;;  %3120 = vmatmul.mubr.msk.f32.vlgmr.msra.gmra.mrb[8].mxu0 %vm572_vm5, %v1461_v40 }
 0x97d   : > { %v3421_v43 = vpop.eup %3420 }
 0x97e   : > { %v3346_v44 = vpop.permute.xlu1 %3345  ;;  %v1453_v45 = vpop.xlane.xlu0 %1452  ;;  %v1463_v46 = vmul.f32 %v3421_v43, %v3405_v14  ;;  %v1943_v14 = vld [vmem:[%s3861_s3 + $0x9c] sm:$0xff] }
 0x97f   : > { %v3348_v47 = vunpack.i.h.bf16 %v3346_v44  ;;  %v3347_v50 = vunpack.i.l.bf16 %v3346_v44  ;;  %3426 = vrcp.f32 %v1453_v45  ;;  %v3272_v15 = vpack.c.bf16 %v1943_v14, %v1942_v11 }
 0x980   : > { %3126 = vmatprep.mubr.msk.f32.mxu1 %vm572_vm5, %v1463_v46 }
 0x981   : > { %v3256_v41 = vpack.c.bf16 %v3348_v47, %v3347_v50 }
 0x982   : > { %v3341_v51 = vpop.permute.xlu0 %3340 }
 0x983   : > { %v3343_v52 = vunpack.i.h.bf16 %v3341_v51  ;;  %v3342_v48 = vunpack.i.l.bf16 %v3341_v51  ;;  %3257 = vmatprep.subr.bf16.mxu0 %v3256_v41 }
 0x984   : > { %3259 = vmatpush3.bf16.msra.mxu0 %v3256_v41 }
 0x985   : > { %v3423_v55 = vpop.eup %3422  ;;  %v3252_v54 = vpack.c.bf16 %v3343_v52, %v3342_v48  ;;  %3269 = vmatprep.subr.bf16.mxu0 %v3268_v13 }
 0x986   : > { %v3425_v56 = vpop.eup %3424  ;;  %v1467_v49 = vmul.f32 %v3423_v55, %v3409_v21 }
 0x987   : > { %3253 = vmatprep.subr.bf16.mxu1 %v3252_v54  ;;  %v1465_v58 = vmul.f32 %v3425_v56, %v3407_v19 }
 0x988   : > { %3255 = vmatpush3.bf16.msra.mxu1 %v3252_v54  ;;  %3133 = vmatprep.mubr.msk.f32.mxu0 %vm572_vm5, %v1467_v49  ;;  %v3460_v54 = vld [vmem:[%s3562_s7] sm:$0xff] }
 0x989   : > { %v3427_v57 = vpop.eup %3426  ;;  %3261 = vmatprep.subr.bf16.mxu1 %v3260_v2 }
 0x98a   : > { %v1469_v53 = vmul.f32 %v3427_v57, %v3411_v25 }
 0x98b   : > { %3127 = vmatmul.mubr.msk.f32.vlgmr.msra.gmra.mrb[10].mxu1 %vm572_vm5, %v1465_v58 }
 0x98c   : > { %3134 = vmatmul.mubr.msk.f32.vlgmr.msra.gmra.mrb[10].mxu0 %vm572_vm5, %v1469_v53  ;;  %3263 = vmatpush3.bf16.msra.mxu1 %v3260_v2 }
 0x98d   : > { %3265 = vmatprep.subr.bf16.mxu1 %v3264_v4  ;;  %3271 = vmatpush3.bf16.msra.mxu0 %v3268_v13 }
 0x98e   : > { %3273 = vmatprep.subr.bf16.mxu0 %v3272_v15 }
 0x990   : > { %3267 = vmatpush3.bf16.msra.mxu1 %v3264_v4 }
 0x991   : > { %3275 = vmatpush3.bf16.msra.mxu0 %v3272_v15 }
 0xa47   : > { %v3114_v59 = vpop.f32.mrb[8].mxu1 }
 0xa48   : > { %1552 = vst.msk [vmem:[#allocation2 + $0x8] sm:$0xff] %vm742_vm12, %v3114_v59  ;;  %v1542_v61 = vpop.f32.mrb[9].mxu1 }
 0xa49   : > { %1551 = vst.msk [vmem:[#allocation2] sm:$0xff] %vm742_vm12, %v1542_v61 }
 0xa4f   : > { %v3121_v60 = vpop.f32.mrb[8].mxu0 }
 0xa50   : > { %1644 = vrot.lane.b32.xlu1 %v3121_v60, %s3475_s12  ;;  %v1631_v62 = vpop.f32.mrb[9].mxu0  ;;  %v3461_v60 = vld [vmem:[%s3562_s7 + $0x8] sm:$0xff] }
 0xa54   : > { %1642 = vrot.lane.b32.xlu1 %v1631_v62, %s3475_s12 }
 0xa5e   : > { %v3128_v5 = vpop.f32.mrb[10].mxu1 }
 0xa5f   : > { %v3135_v6 = vpop.f32.mrb[10].mxu0  ;;  %1741 = vrot.lane.b32.xlu1 %v3128_v5, %s3474_s11  ;;  %v1728_v7 = vpop.f32.mrb[11].mxu1 }
 0xa60   : > { %v1825_v8 = vpop.f32.mrb[11].mxu0  ;;  %1739 = vrot.lane.b32.xlu0 %v1728_v7, %s3474_s11 }
 0xa63   : > { %1838 = vrot.lane.b32.xlu1 %v3135_v6, %s3476_s23 }
 0xa64   : > { %1836 = vrot.lane.b32.xlu0 %v1825_v8, %s3476_s23 }
 0xac2   : > { %v1645_v16 = vpop.permute.xlu1 %1644 }
 0xac3   : > { %1649 = vst.msk [vmem:[#allocation2 + $0x8] sm:$0xff] %vm840_vm13, %v1645_v16 }
 0xac6   : > { %v1643_v19 = vpop.permute.xlu1 %1642 }
 0xac7   : > { %1648 = vst.msk [vmem:[#allocation2] sm:$0xff] %vm840_vm13, %v1643_v19 }
 0xad1   : > { %v1742_v20 = vpop.permute.xlu1 %1741 }
 0xad2   : > { %1746 = vst.msk [vmem:[#allocation2 + $0x8] sm:$0xff] %vm938_vm14, %v1742_v20  ;;  %v1740_v21 = vpop.permute.xlu0 %1739 }
 0xad3   : > { %1745 = vst.msk [vmem:[#allocation2] sm:$0xff] %vm938_vm14, %v1740_v21 }
 0xad5   : > { %v1839_v23 = vpop.permute.xlu1 %1838 }
 0xad6   : > { %1843 = vst.msk [vmem:[#allocation2 + $0x8] sm:$0xff] %vm1036_vm15, %v1839_v23  ;;  %v1837_v25 = vpop.permute.xlu0 %1836 }
 0xad7   : > { %1842 = vst.msk [vmem:[#allocation2] sm:$0xff] %vm1036_vm15, %v1837_v25 }
 0xadd   : > { %v1846_v27 = vld [vmem:[#allocation2 + $0x8] sm:$0xff] }
 0xade   : > { %v1845_v12 = vld [vmem:[#allocation2] sm:$0xff]  ;;  %v1852_v28 = vadd.f32 %v2932_v26, %v1846_v27 }
 0xadf   : > { %v1851_v29 = vadd.f32 %v2932_v26, %v1845_v12 }
 0xae0   : > { %v1854_v33 = vmax.f32 %v1852_v28, 0.0 }
 0xae1   : > { %v1853_v32 = vmax.f32 %v1851_v29, 0.0 }
 0xae3   : > { %3144 = vmatprep.mubr.msk.f32.mxu1 %vm328_vm2, %v1853_v32 }
 0xae4   : > { %3145 = vmatmul.mubr.msk.f32.vlgmr.msra.gmra.mrb[12].mxu1 %vm328_vm2, %v1854_v33 }
 0xbb7   : > { %v3146_v34 = vpop.f32.mrb[12].mxu1 }
 0xbb8   : > { %v1931_v35 = vpop.f32.mrb[13].mxu1 }
 0xbb9   : > { %3155 = vmatprep.mubr.msk.f32.mxu0 %vm328_vm2, %v1931_v35  ;;  %v3276_v36 = vpack.c.bf16 %v3146_v34, %v1931_v35  ;;  %v3760_v37 = vpack.i.bf16 %v3146_v34, %v1931_v35 }
 0xbba   : > { %3156 = vmatmul.mubr.msk.f32.vlgmr.msra.gmra.mrb[12].mxu0 %vm328_vm2, %v3146_v34 }
 0xbbb   : > { %3277 = vmatprep.subr.bf16.mxu1 %v3276_v36 }
 0xbbc   : > { %3279 = vmatpush3.bf16.msra.mxu1 %v3276_v36 }
 0xc8d   : > { %v3157_v31 = vpop.f32.mrb[12].mxu0 }
 0xc8e   : > { %v2016_v38 = vpop.f32.mrb[13].mxu0 }
 0xc8f   : > { %2025 = vxpose.xlu0.b32.start [1/2] (short) (narrow) %v2016_v38, 8 }
 0xc93   : > { %2026 = vxpose.xlu0.b32.end [2/2] (short) (narrow) %v3157_v31, 8 }
 0xd0f   : > { %v2041_v39 = vpop.trf.xlu0 }
 0xd10   : > { %v2060_v40 = vrot.slane %v2041_v39, %v3540_v17  ;;  %v2071_v42 = vrot.slane %v2041_v39, %v3542_v18  ;;  %v2082_v43 = vrot.slane %v2041_v39, %v3546_v22  ;;  %v2093_v44 = vrot.slane %v2041_v39, %v3549_v24 }
 0xd11   : > { %v2102_v45 = vcombine.high %v2041_v39, %v2041_v39 }
 0xd12   : > { %2062 = vbcast.lane.b32.xlu1 %v2060_v40, 256 }
 0xd13   : > { %v2109_v46 = vrot.slane %v2102_v45, %v3552_v30 }
 0xd15   : > { %v2117_v47 = vrot.slane %v2109_v46, %v3552_v30  ;;  %v2110_v41 = vcombine.high %v2109_v46, %v2109_v46 }
 0xd16   : > { %2066 = vbcast.lane.b32.xlu1 %v2060_v40, 264 }
 0xd17   : > { %v2130_v50 = vrot.slane %v2117_v47, %v3540_v17  ;;  %v2124_v52 = vrot.slane %v2110_v41, %v3552_v30  ;;  %v2125_v63 = vcombine.high %v2117_v47, %v2117_v47 }
 0xd19   : > { %v2134_v57 = vrot.slane %v2124_v52, %v3540_v17  ;;  %v2138_v6 = vrot.slane %v2125_v63, %v3540_v17  ;;  %v2126_v14 = vcombine.high %v2124_v52, %v2124_v52 }
 0xd1a   : > { %2073 = vbcast.lane.b32.xlu1 %v2071_v42, 256 }
 0xd1b   : > { %v2142_v25 = vrot.slane %v2126_v14, %v3540_v17 }
 0xd1e   : > { %2077 = vbcast.lane.b32.xlu1 %v2071_v42, 264 }
 0xd22   : > { %2084 = vbcast.lane.b32.xlu1 %v2082_v43, 256 }
 0xd26   : > { %2088 = vbcast.lane.b32.xlu1 %v2082_v43, 264 }
 0xd2a   : > { %2095 = vbcast.lane.b32.xlu1 %v2093_v44, 256 }
 0xd2e   : > { %2099 = vbcast.lane.b32.xlu1 %v2093_v44, 264 }
 0xd84   : > { %v2063_v18 = vpop.permute.xlu1 %2062 }
 0xd85   : > { %v2147_v51 = vadd.f32 %v2130_v50, %v2063_v18 }
 0xd87   : > { %vm2155_vm10 = vcmp.gt.f32.partialorder %v2147_v51, 0.0  ;;  %v2163_v22 = vmul.f32 0.2, %v2147_v51 }
 0xd88   : > { %v2067_v48 = vpop.permute.xlu1 %2066 }
 0xd89   : > { %v2148_v24 = vadd.f32 %v2130_v50, %v2067_v48  ;;  %v2171_v55 = vsel %vm2155_vm10, %v2147_v51, %v2163_v22 }
 0xd8a   : > { %v3772_v56 = vadd.f32 %v3460_v54, %v2171_v55 }
 0xd8b   : > { %vm2156_vm11 = vcmp.gt.f32.partialorder %v2148_v24, 0.0  ;;  %v2164_v49 = vmul.f32 0.2, %v2148_v24 }
 0xd8c   : > { %v2074_v58 = vpop.permute.xlu1 %2073  ;;  %v2187_v53 = vsel %vm572_vm5, %v3772_v56, -inf }
 0xd8d   : > { %v2149_v59 = vadd.f32 %v2134_v57, %v2074_v58  ;;  %2188 = vmax.xlane.f32.xlu0 %v2187_v53  ;;  %v2172_v61 = vsel %vm2156_vm11, %v2148_v24, %v2164_v49 }
 0xd8e   : > { %v2180_v62 = vadd.f32 %v3461_v60, %v2172_v61 }
 0xd8f   : > { %vm2157_vm0 = vcmp.gt.f32.partialorder %v2149_v59, 0.0  ;;  %v2165_v30 = vmul.f32 0.2, %v2149_v59 }
 0xd90   : > { %v2078_v0 = vpop.permute.xlu1 %2077  ;;  %v2190_v1 = vsel %vm572_vm5, %v2180_v62, -inf }
 0xd91   : > { %v2150_v2 = vadd.f32 %v2134_v57, %v2078_v0  ;;  %2191 = vmax.xlane.f32.xlu1 %v2190_v1  ;;  %v2173_v3 = vsel %vm2157_vm0, %v2149_v59, %v2165_v30 }
 0xd92   : > { %v2181_v4 = vadd.f32 %v3460_v54, %v2173_v3 }
 0xd93   : > { %vm2158_vm1 = vcmp.gt.f32.partialorder %v2150_v2, 0.0  ;;  %v2166_v5 = vmul.f32 0.2, %v2150_v2 }
 0xd94   : > { %v2085_v7 = vpop.permute.xlu1 %2084  ;;  %v2193_v8 = vsel %vm572_vm5, %v2181_v4, -inf }
 0xd95   : > { %v2151_v9 = vadd.f32 %v2138_v6, %v2085_v7  ;;  %2194 = vmax.xlane.f32.xlu1 %v2193_v8  ;;  %v2174_v10 = vsel %vm2158_vm1, %v2150_v2, %v2166_v5 }
 0xd96   : > { %v2182_v11 = vadd.f32 %v3461_v60, %v2174_v10 }
 0xd97   : > { %vm2159_vm3 = vcmp.gt.f32.partialorder %v2151_v9, 0.0  ;;  %v2167_v13 = vmul.f32 0.2, %v2151_v9 }
 0xd98   : > { %v2089_v15 = vpop.permute.xlu1 %2088  ;;  %v2196_v16 = vsel %vm572_vm5, %v2182_v11, -inf }
 0xd99   : > { %v2152_v19 = vadd.f32 %v2138_v6, %v2089_v15  ;;  %2197 = vmax.xlane.f32.xlu1 %v2196_v16  ;;  %v2175_v20 = vsel %vm2159_vm3, %v2151_v9, %v2167_v13 }
 0xd9a   : > { %v2183_v21 = vadd.f32 %v3460_v54, %v2175_v20 }
 0xd9b   : > { %vm2160_vm4 = vcmp.gt.f32.partialorder %v2152_v19, 0.0  ;;  %v2168_v23 = vmul.f32 0.2, %v2152_v19 }
 0xd9c   : > { %v2096_v26 = vpop.permute.xlu1 %2095  ;;  %v2199_v27 = vsel %vm572_vm5, %v2183_v21, -inf }
 0xd9d   : > { %v2153_v12 = vadd.f32 %v2142_v25, %v2096_v26  ;;  %2200 = vmax.xlane.f32.xlu0 %v2199_v27  ;;  %v2176_v28 = vsel %vm2160_vm4, %v2152_v19, %v2168_v23 }
 0xd9e   : > { %v2184_v29 = vadd.f32 %v3461_v60, %v2176_v28 }
 0xd9f   : > { %vm2161_vm6 = vcmp.gt.f32.partialorder %v2153_v12, 0.0  ;;  %v2169_v32 = vmul.f32 0.2, %v2153_v12 }
 0xda0   : > { %v2100_v33 = vpop.permute.xlu1 %2099  ;;  %v2202_v34 = vsel %vm572_vm5, %v2184_v29, -inf }
 0xda1   : > { %v2154_v35 = vadd.f32 %v2142_v25, %v2100_v33  ;;  %2203 = vmax.xlane.f32.xlu1 %v2202_v34  ;;  %v2177_v36 = vsel %vm2161_vm6, %v2153_v12, %v2169_v32 }
 0xda2   : > { %v2185_v31 = vadd.f32 %v3460_v54, %v2177_v36 }
 0xda3   : > { %vm2162_vm7 = vcmp.gt.f32.partialorder %v2154_v35, 0.0  ;;  %v2170_v38 = vmul.f32 0.2, %v2154_v35 }
 0xda4   : > { %v2205_v17 = vsel %vm572_vm5, %v2185_v31, -inf }
 0xda5   : > { %2206 = vmax.xlane.f32.xlu0 %v2205_v17  ;;  %v2178_v39 = vsel %vm2162_vm7, %v2154_v35, %v2170_v38 }
 0xda6   : > { %v2186_v40 = vadd.f32 %v3461_v60, %v2178_v39 }
 0xda8   : > { %v2208_v42 = vsel %vm572_vm5, %v2186_v40, -inf }
 0xda9   : > { %2209 = vmax.xlane.f32.xlu1 %v2208_v42 }
 0xe1a   : > { %v2189_v43 = vpop.xlane.xlu0 %2188 }
 0xe1b   : > { %v2211_v44 = vsub.f32 %v3772_v56, %v2189_v43 }
 0xe1d   : > { %v2219_v45 = vmul.f32 1.442695, %v2211_v44 }
 0xe1e   : > { %v2192_v46 = vpop.xlane.xlu1 %2191 }
 0xe1f   : > { %3428 = vpow2.f32 %v2219_v45  ;;  %v2212_v47 = vsub.f32 %v2180_v62, %v2192_v46 }
 0xe21   : > { %v2221_v50 = vmul.f32 1.442695, %v2212_v47 }
 0xe22   : > { %v2195_v41 = vpop.xlane.xlu1 %2194 }
 0xe23   : > { %3430 = vpow2.f32 %v2221_v50  ;;  %v2213_v18 = vsub.f32 %v2181_v4, %v2195_v41 }
 0xe25   : > { %v2223_v51 = vmul.f32 1.442695, %v2213_v18 }
 0xe26   : > { %v2198_v22 = vpop.xlane.xlu1 %2197 }
 0xe27   : > { %3432 = vpow2.f32 %v2223_v51  ;;  %v2214_v52 = vsub.f32 %v2182_v11, %v2198_v22 }
 0xe29   : > { %v3429_v48 = vpop.eup %3428  ;;  %v2225_v24 = vmul.f32 1.442695, %v2214_v52 }
 0xe2a   : > { %v2201_v55 = vpop.xlane.xlu0 %2200  ;;  %v2235_v54 = vsel %vm572_vm5, %v3429_v48, 0.0 }
 0xe2b   : > { %3434 = vpow2.f32 %v2225_v24  ;;  %v2215_v49 = vsub.f32 %v2183_v21, %v2201_v55  ;;  %2236 = vadd.xlane.f32.xlu0 %v2235_v54 }
 0xe2d   : > { %v3431_v56 = vpop.eup %3430  ;;  %v2227_v57 = vmul.f32 1.442695, %v2215_v49 }
 0xe2e   : > { %v2204_v58 = vpop.xlane.xlu1 %2203  ;;  %v2238_v53 = vsel %vm572_vm5, %v3431_v56, 0.0 }
 0xe2f   : > { %3436 = vpow2.f32 %v2227_v57  ;;  %v2216_v59 = vsub.f32 %v2184_v29, %v2204_v58  ;;  %2239 = vadd.xlane.f32.xlu1 %v2238_v53  ;;  %v3477_v58 = vmov 0.0|0.0  }
 0xe31   : > { %v3433_v61 = vpop.eup %3432  ;;  %v2229_v60 = vmul.f32 1.442695, %v2216_v59 }
 0xe32   : > { %v2207_v62 = vpop.xlane.xlu0 %2206  ;;  %v2241_v30 = vsel %vm572_vm5, %v3433_v61, 0.0 }
 0xe33   : > { %3438 = vpow2.f32 %v2229_v60  ;;  %v2217_v63 = vsub.f32 %v2185_v31, %v2207_v62  ;;  %2242 = vadd.xlane.f32.xlu0 %v2241_v30  ;;  %v2734_v60 = vld [vmem:[%s3861_s3 + $0xa4] sm:$0xff]  ;;  %v2735_v62 = vld [vmem:[%s3861_s3 + $0xac] sm:$0xff]  ;;  %v2736_v30 = vld [vmem:[%s3861_s3 + $0xb4] sm:$0xff] }
 0xe35   : > { %v3791_v0 = vpop.eup %3434  ;;  %v2231_v1 = vmul.f32 1.442695, %v2217_v63  ;;  %v3296_v63 = vpack.c.bf16 %v2735_v62, %v2734_v60 }
 0xe36   : > { %v2244_v2 = vsel %vm572_vm5, %v3791_v0, 0.0  ;;  %v2210_v9 = vpop.xlane.xlu1 %2209 }
 0xe37   : > { %3440 = vpow2.f32 %v2231_v1  ;;  %2245 = vadd.xlane.f32.xlu1 %v2244_v2  ;;  %v2218_v10 = vsub.f32 %v2186_v40, %v2210_v9 }
 0xe39   : > { %v3437_v3 = vpop.eup %3436  ;;  %v2233_v11 = vmul.f32 1.442695, %v2218_v10 }
 0xe3a   : > { %v2247_v4 = vsel %vm572_vm5, %v3437_v3, 0.0 }
 0xe3b   : > { %2248 = vadd.xlane.f32.xlu0 %v2247_v4  ;;  %3442 = vpow2.f32 %v2233_v11 }
 0xe3d   : > { %v3439_v5 = vpop.eup %3438 }
 0xe3e   : > { %v2250_v6 = vsel %vm572_vm5, %v3439_v5, 0.0 }
 0xe3f   : > { %2251 = vadd.xlane.f32.xlu1 %v2250_v6 }
 0xe41   : > { %v3441_v7 = vpop.eup %3440 }
 0xe42   : > { %v2253_v8 = vsel %vm572_vm5, %v3441_v7, 0.0 }
 0xe43   : > { %2254 = vadd.xlane.f32.xlu0 %v2253_v8  ;;  %v2945_v8 = vld [vmem:[%s3861_s3 + $0xc6] ss:$0 sm:$0xff] }
 0xe45   : > { %v3443_v13 = vpop.eup %3442 }
 0xe46   : > { %v2256_v14 = vsel %vm572_vm5, %v3443_v13, 0.0 }
 0xe50   : > { %3355 = vrot.lane.b32.xlu1 %v3760_v37, %s3471_s8 }
 0xe59   : > { %3350 = vrot.lane.b32.xlu0 %v3760_v37, %s3472_s9 }
 0xe74   : > { %2257 = vadd.xlane.f32.xlu1 %v2256_v14 }
 0xe85   : > { %3360 = vrot.lane.b32.xlu1 %v3760_v37, %s3473_s10 }
 0xeb8   : > { %v2237_v15 = vpop.xlane.xlu0 %2236 }
 0xeb9   : > { %3444 = vrcp.f32 %v2237_v15 }
 0xebc   : > { %v2240_v16 = vpop.xlane.xlu1 %2239 }
 0xebd   : > { %3446 = vrcp.f32 %v2240_v16 }
 0xec0   : > { %v2243_v19 = vpop.xlane.xlu0 %2242 }
 0xec1   : > { %3448 = vrcp.f32 %v2243_v19  ;;  %v2660_v19 = vld [vmem:[%s228_s24] sm:$0x3] }
 0xec3   : > { %v3445_v20 = vpop.eup %3444 }
 0xec4   : > { %v2260_v21 = vmul.f32 %v3445_v20, %v3429_v48  ;;  %v2246_v26 = vpop.xlane.xlu1 %2245 }
 0xec6   : > { %3162 = vmatprep.mubr.msk.f32.mxu1 %vm572_vm5, %v2260_v21 }
 0xec7   : > { %v3447_v23 = vpop.eup %3446 }
 0xec8   : > { %v2262_v25 = vmul.f32 %v3447_v23, %v3431_v56  ;;  %v2249_v27 = vpop.xlane.xlu0 %2248  ;;  %v2947_v23 = vld [vmem:[%s3861_s3 + $0xc7] ss:$0 sm:$0xff] }
 0xec9   : > { %3450 = vrcp.f32 %v2249_v27 }
 0xeca   : > { %3163 = vmatmul.mubr.msk.f32.vlgmr.msra.gmra.mrb[14].mxu1 %vm572_vm5, %v2262_v25 }
 0xecb   : > { %v3449_v12 = vpop.eup %3448 }
 0xecc   : > { %v2252_v28 = vpop.xlane.xlu1 %2251  ;;  %v2264_v37 = vmul.f32 %v3449_v12, %v3433_v61  ;;  %v3479_v61 = vmov 0.0  }
 0xecd   : > { %3452 = vrcp.f32 %v2252_v28 }
 0xece   : > { %3454 = vrcp.f32 %v2246_v26  ;;  %3169 = vmatprep.mubr.msk.f32.mxu0 %vm572_vm5, %v2264_v37 }
 0xed0   : > { %v2255_v29 = vpop.xlane.xlu0 %2254  ;;  %v3356_v32 = vpop.permute.xlu1 %3355 }
 0xed1   : > { %3456 = vrcp.f32 %v2255_v29  ;;  %v3358_v33 = vunpack.i.h.bf16 %v3356_v32  ;;  %v3357_v34 = vunpack.i.l.bf16 %v3356_v32 }
 0xed3   : > { %v3451_v35 = vpop.eup %3450  ;;  %v3284_v36 = vpack.c.bf16 %v3358_v33, %v3357_v34 }
 0xed4   : > { %v3351_v31 = vpop.permute.xlu0 %3350  ;;  %v2268_v38 = vmul.f32 %v3451_v35, %v3437_v3 }
 0xed5   : > { %v3353_v17 = vunpack.i.h.bf16 %v3351_v31  ;;  %v3352_v39 = vunpack.i.l.bf16 %v3351_v31  ;;  %3285 = vmatprep.subr.bf16.mxu1 %v3284_v36 }
 0xed6   : > { %3287 = vmatpush3.bf16.msra.mxu1 %v3284_v36  ;;  %3176 = vmatprep.mubr.msk.f32.mxu1 %vm572_vm5, %v2268_v38 }
 0xed7   : > { %v3453_v40 = vpop.eup %3452  ;;  %v3280_v42 = vpack.c.bf16 %v3353_v17, %v3352_v39  ;;  %3292 = vmatprep.subr.bf16.mxu1 %v3477_v58 }
 0xed8   : > { %v3455_v43 = vpop.eup %3454  ;;  %v2270_v44 = vmul.f32 %v3453_v40, %v3439_v5 }
 0xed9   : > { %3281 = vmatprep.subr.bf16.mxu0 %v3280_v42  ;;  %v2266_v46 = vmul.f32 %v3455_v43, %v3791_v0  ;;  %v2737_v0 = vld [vmem:[%s3861_s3 + $0xbc] sm:$0xff] }
 0xeda   : > { %3283 = vmatpush3.bf16.msra.mxu0 %v3280_v42  ;;  %3177 = vmatmul.mubr.msk.f32.vlgmr.msra.gmra.mrb[16].mxu1 %vm572_vm5, %v2270_v44  ;;  %v3299_v1 = vpack.c.bf16 %v2737_v0, %v2736_v30 }
 0xedb   : > { %v3457_v45 = vpop.eup %3456 }
 0xedc   : > { %v2272_v47 = vmul.f32 %v3457_v45, %v3441_v7 }
 0xedd   : > { %3170 = vmatmul.mubr.msk.f32.vlgmr.msra.gmra.mrb[14].mxu0 %vm572_vm5, %v2266_v46 }
 0xede   : > { %3183 = vmatprep.mubr.msk.f32.mxu0 %vm572_vm5, %v2272_v47 }
 0xf01   : > { %v2258_v50 = vpop.xlane.xlu1 %2257 }
 0xf02   : > { %3458 = vrcp.f32 %v2258_v50 }
 0xf05   : > { %v3361_v41 = vpop.permute.xlu1 %3360 }
 0xf06   : > { %v3363_v18 = vunpack.i.h.bf16 %v3361_v41  ;;  %v3362_v51 = vunpack.i.l.bf16 %v3361_v41 }
 0xf08   : > { %v3288_v22 = vpack.c.bf16 %v3363_v18, %v3362_v51 }
 0xf0a   : > { %3289 = vmatprep.subr.bf16.mxu0 %v3288_v22 }
 0xf0b   : > { %3291 = vmatpush3.bf16.msra.mxu0 %v3288_v22 }
 0xf0c   : > { %v3459_v52 = vpop.eup %3458  ;;  %3295 = vmatprep.subr.bf16.mxu0 %v3477_v58 }
 0xf0d   : > { %v2274_v48 = vmul.f32 %v3459_v52, %v3443_v13 }
 0xf0f   : > { %3184 = vmatmul.mubr.msk.f32.vlgmr.msra.gmra.mrb[16].mxu0 %vm572_vm5, %v2274_v48 }
 0xf10   : > { %3297 = vmatpush3.bf16.msra.mxu0 %v3296_v63 }
 0xf11   : > { %3298 = vmatprep.subr.bf16.mxu0 %v3477_v58 }
 0xf14   : > { %3300 = vmatpush3.bf16.msra.mxu0 %v3299_v1 }
 0xf9d   : > { %v3164_v24 = vpop.f32.mrb[14].mxu1 }
 0xf9e   : > { %2357 = vst.msk [vmem:[#allocation2 + $0x8] sm:$0xff] %vm742_vm12, %v3164_v24  ;;  %v2347_v55 = vpop.f32.mrb[15].mxu1 }
 0xf9f   : > { %2356 = vst.msk [vmem:[#allocation2] sm:$0xff] %vm742_vm12, %v2347_v55  ;;  %vm3478_vm12 = vmmov 0  }
 0xfa0   : > { %3190 = vmatprep.mubr.msk.f32.mxu1 %vm3478_vm12, %v3479_v61  ;;  %3201 = vmatprep.mubr.msk.f32.mxu0 %vm3478_vm12, %v3479_v61 }
 0xfad   : > { %v3178_v54 = vpop.f32.mrb[16].mxu1 }
 0xfae   : > { %v2533_v49 = vpop.f32.mrb[17].mxu1 }
 0xfb0   : > { %v3171_v56 = vpop.f32.mrb[14].mxu0 }
 0xfb1   : > { %2449 = vrot.lane.b32.xlu0 %v3171_v56, %s3475_s12  ;;  %v2436_v57 = vpop.f32.mrb[15].mxu0 }
 0xfb2   : > { %2447 = vrot.lane.b32.xlu1 %v2436_v57, %s3475_s12 }
 0xfb5   : > { %2546 = vrot.lane.b32.xlu0 %v3178_v54, %s3474_s11 }
 0xfb6   : > { %2544 = vrot.lane.b32.xlu1 %v2533_v49, %s3474_s11 }
 0xfe2   : > { %v3185_v53 = vpop.f32.mrb[16].mxu0 }
 0xfe3   : > { %v2630_v59 = vpop.f32.mrb[17].mxu0  ;;  %2643 = vrot.lane.b32.xlu0 %v3185_v53, %s3476_s23 }
 0xfe4   : > { %2641 = vrot.lane.b32.xlu1 %v2630_v59, %s3476_s23 }
0x1023   : > { %v2450_v2 = vpop.permute.xlu0 %2449 }
0x1024   : > { %2454 = vst.msk [vmem:[#allocation2 + $0x8] sm:$0xff] %vm840_vm13, %v2450_v2  ;;  %v2448_v3 = vpop.permute.xlu1 %2447 }
0x1025   : > { %2453 = vst.msk [vmem:[#allocation2] sm:$0xff] %vm840_vm13, %v2448_v3  ;;  %vm2816_vm13 = vcmask 17408  }
0x1027   : > { %v2547_v4 = vpop.permute.xlu0 %2546 }
0x1028   : > { %2551 = vst.msk [vmem:[#allocation2 + $0x8] sm:$0xff] %vm938_vm14, %v2547_v4  ;;  %v2545_v5 = vpop.permute.xlu1 %2544 }
0x1029   : > { %2550 = vst.msk [vmem:[#allocation2] sm:$0xff] %vm938_vm14, %v2545_v5 }
0x1055   : > { %v2644_v6 = vpop.permute.xlu0 %2643 }
0x1056   : > { %2648 = vst.msk [vmem:[#allocation2 + $0x8] sm:$0xff] %vm1036_vm15, %v2644_v6  ;;  %v2642_v7 = vpop.permute.xlu1 %2641 }
0x1057   : > { %2647 = vst.msk [vmem:[#allocation2] sm:$0xff] %vm1036_vm15, %v2642_v7 }
0x105d   : > { %v2651_v9 = vld [vmem:[#allocation2 + $0x8] sm:$0xff] }
0x105e   : > { %v2650_v10 = vld [vmem:[#allocation2] sm:$0xff]  ;;  %v2657_v11 = vadd.f32 %v2945_v8, %v2651_v9 }
0x105f   : > { %v2656_v13 = vadd.f32 %v2945_v8, %v2650_v10 }
0x1060   : > { %v2659_v14 = vmax.f32 %v2657_v11, 0.0 }
0x1061   : > { %v2658_v15 = vmax.f32 %v2656_v13, 0.0 }
0x1063   : > { %v3293_v16 = vpack.c.bf16 %v2659_v14, %v2658_v15 }
0x1065   : > { %3294 = vmatpush3.bf16.msra.mxu1 %v3293_v16 }
0x1068   : > { %3191 = vmatmul.mubr.msk.f32.vlgmr.msra.gmra.mrb[18].mxu1 %vm572_vm5, %v2660_v19 }
0x113b   : > { %v2730_v20 = vpop.f32.mrb[18].mxu1 }
0x113c   : > { %v3192_v21 = vpop.f32.mrb[19].mxu1  ;;  %3202 = vmatmul.mubr.msk.f32.vlgmr.msra.gmra.mrb[18].mxu0 %vm328_vm2, %v2730_v20 }
0x120f   : > { %v2812_v25 = vpop.f32.mrb[18].mxu0 }
0x1210   : > { %v2813_v26 = vadd.f32 %v2947_v23, %v2812_v25  ;;  %v3203_v27 = vpop.f32.mrb[19].mxu0 }
0x1212   : > { %2817 = vst.msk [vmem:[%s232_s28] sm:$0x3] %vm2816_vm13, %v2813_v26 }
0x1213 PF: > { %s14_s15 = sadd.s32 1, %s3468_s15  }
0x1214   : > { %p11_p4 = scmp.ge.s32.totalorder %s14_s15, 6  }
0x1216   :  { %13 = sbr.rel (!%p11_p4) target bundleno = 1 (0x1), region = 72 }

</bundles_post_ra>
